<compile_context>
chip_gen: v5e
topology: v5e:2x2
jax: 0.10.0
libtpu: 0.0.40
codegen_flags: <defaults>
</compile_context>

<pallas_src>
import functools

import jax
import jax.numpy as jnp
from jax import lax
from jax.experimental import pallas as pl
from jax.experimental.pallas import tpu as pltpu

LEAKY_SLOPE = 0.01   # nn.LeakyReLU default
IN_EPS = 1e-5        # nn.InstanceNorm2d default eps (affine=False, biased variance)


def _unet_inner_kernel(x_ref, w1_ref, w2_ref, wt_ref, bt_ref, out_ref,
                       padA, padB, *, B, Hp, Wp, Cin, Cout):
    """Whole (small) batch in one invocation; all matmuls have M = B*Hp*Wp."""
    Nn = Hp * Wp
    BN = B * Nn

    # ---- MaxPool2d(2, 2): max over the 4 pre-split pool phases (lane-dense) ----
    pooled_t = jnp.maximum(jnp.maximum(x_ref[0], x_ref[1]),
                           jnp.maximum(x_ref[2], x_ref[3]))            # (Cin, BN)
    pooled = pooled_t.T                                                # (BN, Cin)

    # zero-padded (pad=1) activation scratch; halo zeroed once, interior overwritten
    padA[...] = jnp.zeros(padA.shape, padA.dtype)
    padB[...] = jnp.zeros(padB.shape, padB.dtype)
    padA[:, 1:Hp + 1, 1:Wp + 1, :] = pooled.reshape(B, Hp, Wp, Cin)

    def conv3x3_in_lrelu(pad_ref, w_ref, cin):
        # im2col: 9 shifted windows concatenated along lanes -> one MXU matmul (K = 9*cin)
        cols = []
        for ky in range(3):
            for kx in range(3):
                win = pad_ref[:, ky:ky + Hp, kx:kx + Wp, :]            # (B, Hp, Wp, cin)
                cols.append(win.reshape(BN, cin))
        lhs = jnp.concatenate(cols, axis=1)                            # (BN, 9*cin)
        acc = jnp.dot(lhs, w_ref[...], preferred_element_type=jnp.float32)  # (BN, Cout)
        # conv bias omitted: per-channel constant cancels in InstanceNorm2d (affine=False)
        a3 = acc.reshape(B, Nn, Cout)
        mean = jnp.mean(a3, axis=1, keepdims=True)                     # per (sample, channel)
        var = jnp.mean((a3 - mean) ** 2, axis=1, keepdims=True)
        h = (a3 - mean) * lax.rsqrt(var + IN_EPS)
        h = jnp.where(h >= 0, h, LEAKY_SLOPE * h)                      # LeakyReLU(0.01)
        return h.reshape(BN, Cout)

    # ---- conv1 / conv2 ----------------------------------------------------------
    h1 = conv3x3_in_lrelu(padA, w1_ref, Cin)                           # (BN, Cout)
    padB[:, 1:Hp + 1, 1:Wp + 1, :] = h1.reshape(B, Hp, Wp, Cout)
    h2 = conv3x3_in_lrelu(padB, w2_ref, Cout)                          # (BN, Cout)

    # ---- ConvTranspose2d(Cout -> Cin, k=2, s=2): all 4 phases in one matmul ------
    # u[r, p*Cin + c] = out pixel (2i+dy, 2j+dx), channel c, for r = b*Nn + i*Wp + j
    u = jnp.dot(h2, wt_ref[...], preferred_element_type=jnp.float32) + bt_ref[...]
    # lane-dense output (4*Cin, BN): unmasked stores; interleave happens in the wrapper
    out_ref[...] = u.T.astype(out_ref.dtype)


def unet_skip_innermost(x, params):
    """x: NCHW float32 (B, Cin, H, W)  ->  (B, 2*Cin, H, W), matching torch forward."""
    B, Cin, H, W = x.shape
    assert H % 2 == 0 and W % 2 == 0
    Hp, Wp = H // 2, W // 2
    Nn = Hp * Wp
    BN = B * Nn
    w1, b1, w2, b2, wt, bt = params
    Cout = w1.shape[0]
    assert Cout == 2 * Cin, "module requires out_channels == 2 * in_channels (innermost)"
    del b1, b2  # constants per channel cancel inside InstanceNorm2d (affine=False)

    xf = x.astype(jnp.float32)

    # pool-phase / lane-dense input layout: xw[2*dy+dx, c, b*Nn + i*Wp + j] = x[b,c,2i+dy,2j+dx]
    xw = jnp.transpose(xf.reshape(B, Cin, Hp, 2, Wp, 2),
                       (3, 5, 1, 0, 2, 4)).reshape(4, Cin, BN)

    # weight packing (wrapper glue):
    #   conv:  torch (O, I, 3, 3) -> (3, 3, I, O) -> (9*I, O), row = ky*3*I + kx*I + c
    #   convT: torch (I=Cout, O=Cin, 2, 2) -> (Cout, 2, 2, Cin) -> (Cout, 4*Cin),
    #          column = (2*dy + dx)*Cin + c
    w1p = jnp.transpose(w1, (2, 3, 1, 0)).reshape(9 * Cin, Cout).astype(jnp.float32)
    w2p = jnp.transpose(w2, (2, 3, 1, 0)).reshape(9 * Cout, Cout).astype(jnp.float32)
    wtp = jnp.transpose(wt, (0, 2, 3, 1)).reshape(Cout, 4 * Cin).astype(jnp.float32)
    btp = jnp.tile(bt.astype(jnp.float32), 4).reshape(1, 4 * Cin)

    kernel = functools.partial(_unet_inner_kernel,
                               B=B, Hp=Hp, Wp=Wp, Cin=Cin, Cout=Cout)

    out_k = pl.pallas_call(
        kernel,
        out_shape=jax.ShapeDtypeStruct((4 * Cin, BN), jnp.float32),
        scratch_shapes=[
            pltpu.VMEM((B, Hp + 2, Wp + 2, Cin), jnp.float32),    # padded conv1 input
            pltpu.VMEM((B, Hp + 2, Wp + 2, Cout), jnp.float32),   # padded conv2 input
        ],
    )(xw, w1p, w2p, wtp, btp)

    # interleave the 4 transpose-conv phases back to NCHW (pure layout glue)
    up = jnp.transpose(out_k.reshape(2, 2, Cin, B, Hp, Wp),
                       (3, 2, 4, 0, 5, 1)).reshape(B, Cin, H, W)
    # center_crop is the identity here (upconv restores exactly (H, W))
    return jnp.concatenate([xf, up], axis=1)                          # torch.cat([x, crop], 1)


# ----------------------------- pure-JAX reference ------------------------------
def ref_forward(x, params):
    w1, b1, w2, b2, wt, bt = params
    B, C, H, W = x.shape
    xp = x.reshape(B, C, H // 2, 2, W // 2, 2).max(axis=(3, 5))

    def conv3(h, w, b):
        y = lax.conv_general_dilated(h, w, (1, 1), ((1, 1), (1, 1)),
                                     dimension_numbers=("NCHW", "OIHW", "NCHW"),
                                     precision=lax.Precision.HIGHEST)
        return y + b[None, :, None, None]

    def in_lrelu(y):
        m = y.mean(axis=(2, 3), keepdims=True)
        v = ((y - m) ** 2).mean(axis=(2, 3), keepdims=True)
        h = (y - m) / jnp.sqrt(v + IN_EPS)
        return jnp.where(h >= 0, h, LEAKY_SLOPE * h)

    h = in_lrelu(conv3(xp, w1, b1))
    h = in_lrelu(conv3(h, w2, b2))
    t = jnp.einsum("bcij,cdyx->bdiyjx", h, wt, precision=lax.Precision.HIGHEST)
    up = t.reshape(B, wt.shape[1], H, W) + bt[None, :, None, None]
    return jnp.concatenate([x, up], axis=1)


if __name__ == "__main__":
    key = jax.random.PRNGKey(0)
    B, Cin, H, W = 2, 4, 16, 16
    Cout = 2 * Cin                      # innermost block: out_channels == 2 * in_channels
    ks = jax.random.split(key, 7)

    x = jax.random.normal(ks[0], (B, Cin, H, W), jnp.float32)
    # deterministic synthetic parameters, PyTorch layouts
    w1 = 0.2 * jax.random.normal(ks[1], (Cout, Cin, 3, 3), jnp.float32)   # Conv2d
    b1 = 0.1 * jax.random.normal(ks[2], (Cout,), jnp.float32)
    w2 = 0.2 * jax.random.normal(ks[3], (Cout, Cout, 3, 3), jnp.float32)  # Conv2d
    b2 = 0.1 * jax.random.normal(ks[4], (Cout,), jnp.float32)
    wt = 0.2 * jax.random.normal(ks[5], (Cout, Cin, 2, 2), jnp.float32)   # ConvTranspose2d
    bt = 0.1 * jax.random.normal(ks[6], (Cin,), jnp.float32)
    params = (w1, b1, w2, b2, wt, bt)

    out = jax.block_until_ready(unet_skip_innermost(x, params))
    ref = jax.block_until_ready(ref_forward(x, params))

    assert out.shape == (B, 2 * Cin, H, W), out.shape
    max_err = float(jnp.max(jnp.abs(out - ref)))
    assert max_err < 1e-3, f"mismatch vs reference: {max_err}"
    print("KERNEL_OK")
</pallas_src>

<mosaic_0001>
module attributes {stable_mosaic.version = 11 : i64} {
  func.func @_unet_inner_kernel(%arg0: memref<4x4x128xf32, #tpu.memory_space<vmem>>, %arg1: memref<36x8xf32, #tpu.memory_space<vmem>>, %arg2: memref<72x8xf32, #tpu.memory_space<vmem>>, %arg3: memref<8x16xf32, #tpu.memory_space<vmem>>, %arg4: memref<1x16xf32, #tpu.memory_space<vmem>>, %arg5: memref<16x128xf32, #tpu.memory_space<vmem>>, %arg6: memref<2x10x10x4xf32, #tpu.memory_space<vmem>>, %arg7: memref<2x10x10x8xf32, #tpu.memory_space<vmem>>) attributes {dimension_semantics = [], scalar_prefetch = 0 : i64, scratch_operands = 2 : i64, tpu.core_type = #tpu.core_type<tc>} {
    %c0 = arith.constant 0 : index
    %c0_0 = arith.constant 0 : index
    %c0_1 = arith.constant 0 : index
    %0 = vector.load %arg0[%c0, %c0_0, %c0_1] : memref<4x4x128xf32, #tpu.memory_space<vmem>>, vector<1x4x128xf32>
    %1 = vector.shape_cast %0 : vector<1x4x128xf32> to vector<4x128xf32>
    %c1 = arith.constant 1 : index
    %c0_2 = arith.constant 0 : index
    %c0_3 = arith.constant 0 : index
    %2 = vector.load %arg0[%c1, %c0_2, %c0_3] : memref<4x4x128xf32, #tpu.memory_space<vmem>>, vector<1x4x128xf32>
    %3 = vector.shape_cast %2 : vector<1x4x128xf32> to vector<4x128xf32>
    %4 = arith.maximumf %1, %3 : vector<4x128xf32>
    %c2 = arith.constant 2 : index
    %c0_4 = arith.constant 0 : index
    %c0_5 = arith.constant 0 : index
    %5 = vector.load %arg0[%c2, %c0_4, %c0_5] : memref<4x4x128xf32, #tpu.memory_space<vmem>>, vector<1x4x128xf32>
    %6 = vector.shape_cast %5 : vector<1x4x128xf32> to vector<4x128xf32>
    %c3 = arith.constant 3 : index
    %c0_6 = arith.constant 0 : index
    %c0_7 = arith.constant 0 : index
    %7 = vector.load %arg0[%c3, %c0_6, %c0_7] : memref<4x4x128xf32, #tpu.memory_space<vmem>>, vector<1x4x128xf32>
    %8 = vector.shape_cast %7 : vector<1x4x128xf32> to vector<4x128xf32>
    %9 = arith.maximumf %6, %8 : vector<4x128xf32>
    %10 = arith.maximumf %4, %9 : vector<4x128xf32>
    %11 = tpu.transpose %10, [1, 0] : vector<4x128xf32> -> vector<128x4xf32>
    %cst = arith.constant 0.000000e+00 : f32
    %12 = vector.broadcast %cst : f32 to vector<2x10x10x4xf32>
    %c0_8 = arith.constant 0 : index
    %c0_9 = arith.constant 0 : index
    %c0_10 = arith.constant 0 : index
    %c0_11 = arith.constant 0 : index
    %13 = vector.load %arg6[%c0_8, %c0_9, %c0_10, %c0_11] : memref<2x10x10x4xf32, #tpu.memory_space<vmem>>, vector<2x10x10x4xf32>
    tpu.vector_store %arg6[%c0_8, %c0_9, %c0_10, %c0_11], %12 {strides = array<i32>} : memref<2x10x10x4xf32, #tpu.memory_space<vmem>>, vector<2x10x10x4xf32>,
    %cst_12 = arith.constant 0.000000e+00 : f32
    %14 = vector.broadcast %cst_12 : f32 to vector<2x10x10x8xf32>
    %c0_13 = arith.constant 0 : index
    %c0_14 = arith.constant 0 : index
    %c0_15 = arith.constant 0 : index
    %c0_16 = arith.constant 0 : index
    %15 = vector.load %arg7[%c0_13, %c0_14, %c0_15, %c0_16] : memref<2x10x10x8xf32, #tpu.memory_space<vmem>>, vector<2x10x10x8xf32>
    tpu.vector_store %arg7[%c0_13, %c0_14, %c0_15, %c0_16], %14 {strides = array<i32>} : memref<2x10x10x8xf32, #tpu.memory_space<vmem>>, vector<2x10x10x8xf32>,
    %16 = vector.shape_cast %11 : vector<128x4xf32> to vector<2x8x8x4xf32>
    %c0_17 = arith.constant 0 : index
    %c1_18 = arith.constant 1 : index
    %c1_19 = arith.constant 1 : index
    %c0_20 = arith.constant 0 : index
    %17 = vector.load %arg6[%c0_17, %c1_18, %c1_19, %c0_20] : memref<2x10x10x4xf32, #tpu.memory_space<vmem>>, vector<2x8x8x4xf32>
    tpu.vector_store %arg6[%c0_17, %c1_18, %c1_19, %c0_20], %16 {strides = array<i32>} : memref<2x10x10x4xf32, #tpu.memory_space<vmem>>, vector<2x8x8x4xf32>,
    %c0_21 = arith.constant 0 : index
    %c0_22 = arith.constant 0 : index
    %c0_23 = arith.constant 0 : index
    %c0_24 = arith.constant 0 : index
    %18 = vector.load %arg6[%c0_21, %c0_22, %c0_23, %c0_24] : memref<2x10x10x4xf32, #tpu.memory_space<vmem>>, vector<2x8x8x4xf32>
    %19 = vector.shape_cast %18 : vector<2x8x8x4xf32> to vector<128x4xf32>
    %c0_25 = arith.constant 0 : index
    %c0_26 = arith.constant 0 : index
    %c1_27 = arith.constant 1 : index
    %c0_28 = arith.constant 0 : index
    %20 = vector.load %arg6[%c0_25, %c0_26, %c1_27, %c0_28] : memref<2x10x10x4xf32, #tpu.memory_space<vmem>>, vector<2x8x8x4xf32>
    %21 = vector.shape_cast %20 : vector<2x8x8x4xf32> to vector<128x4xf32>
    %c0_29 = arith.constant 0 : index
    %c0_30 = arith.constant 0 : index
    %c2_31 = arith.constant 2 : index
    %c0_32 = arith.constant 0 : index
    %22 = vector.load %arg6[%c0_29, %c0_30, %c2_31, %c0_32] : memref<2x10x10x4xf32, #tpu.memory_space<vmem>>, vector<2x8x8x4xf32>
    %23 = vector.shape_cast %22 : vector<2x8x8x4xf32> to vector<128x4xf32>
    %c0_33 = arith.constant 0 : index
    %c1_34 = arith.constant 1 : index
    %c0_35 = arith.constant 0 : index
    %c0_36 = arith.constant 0 : index
    %24 = vector.load %arg6[%c0_33, %c1_34, %c0_35, %c0_36] : memref<2x10x10x4xf32, #tpu.memory_space<vmem>>, vector<2x8x8x4xf32>
    %25 = vector.shape_cast %24 : vector<2x8x8x4xf32> to vector<128x4xf32>
    %c0_37 = arith.constant 0 : index
    %c1_38 = arith.constant 1 : index
    %c1_39 = arith.constant 1 : index
    %c0_40 = arith.constant 0 : index
    %26 = vector.load %arg6[%c0_37, %c1_38, %c1_39, %c0_40] : memref<2x10x10x4xf32, #tpu.memory_space<vmem>>, vector<2x8x8x4xf32>
    %27 = vector.shape_cast %26 : vector<2x8x8x4xf32> to vector<128x4xf32>
    %c0_41 = arith.constant 0 : index
    %c1_42 = arith.constant 1 : index
    %c2_43 = arith.constant 2 : index
    %c0_44 = arith.constant 0 : index
    %28 = vector.load %arg6[%c0_41, %c1_42, %c2_43, %c0_44] : memref<2x10x10x4xf32, #tpu.memory_space<vmem>>, vector<2x8x8x4xf32>
    %29 = vector.shape_cast %28 : vector<2x8x8x4xf32> to vector<128x4xf32>
    %c0_45 = arith.constant 0 : index
    %c2_46 = arith.constant 2 : index
    %c0_47 = arith.constant 0 : index
    %c0_48 = arith.constant 0 : index
    %30 = vector.load %arg6[%c0_45, %c2_46, %c0_47, %c0_48] : memref<2x10x10x4xf32, #tpu.memory_space<vmem>>, vector<2x8x8x4xf32>
    %31 = vector.shape_cast %30 : vector<2x8x8x4xf32> to vector<128x4xf32>
    %c0_49 = arith.constant 0 : index
    %c2_50 = arith.constant 2 : index
    %c1_51 = arith.constant 1 : index
    %c0_52 = arith.constant 0 : index
    %32 = vector.load %arg6[%c0_49, %c2_50, %c1_51, %c0_52] : memref<2x10x10x4xf32, #tpu.memory_space<vmem>>, vector<2x8x8x4xf32>
    %33 = vector.shape_cast %32 : vector<2x8x8x4xf32> to vector<128x4xf32>
    %c0_53 = arith.constant 0 : index
    %c2_54 = arith.constant 2 : index
    %c2_55 = arith.constant 2 : index
    %c0_56 = arith.constant 0 : index
    %34 = vector.load %arg6[%c0_53, %c2_54, %c2_55, %c0_56] : memref<2x10x10x4xf32, #tpu.memory_space<vmem>>, vector<2x8x8x4xf32>
    %35 = vector.shape_cast %34 : vector<2x8x8x4xf32> to vector<128x4xf32>
    %36 = tpu.concatenate %19, %21, %23, %25, %27, %29, %31, %33, %35 in 1 : vector<128x4xf32>, vector<128x4xf32>, vector<128x4xf32>, vector<128x4xf32>, vector<128x4xf32>, vector<128x4xf32>, vector<128x4xf32>, vector<128x4xf32>, vector<128x4xf32> -> vector<128x36xf32>
    %c0_57 = arith.constant 0 : index
    %c0_58 = arith.constant 0 : index
    %37 = vector.load %arg1[%c0_57, %c0_58] : memref<36x8xf32, #tpu.memory_space<vmem>>, vector<36x8xf32>
    %cst_59 = arith.constant dense<0.000000e+00> : vector<128x8xf32>
    %38 = tpu.matmul %36, %37, %cst_59 {dimension_numbers = #tpu.dot_dimension_numbers<[1], [0], [0], [1], [0, 0, 1, 1], [], []>} : vector<128x36xf32>, vector<36x8xf32>, vector<128x8xf32> -> vector<128x8xf32>
    %39 = vector.shape_cast %38 : vector<128x8xf32> to vector<2x64x8xf32>
    %cst_60 = arith.constant dense<0.000000e+00> : vector<2x8xf32>
    %40 = vector.multi_reduction <add>, %39, %cst_60 [1] : vector<2x64x8xf32> to vector<2x8xf32>
    %41 = vector.shape_cast %40 : vector<2x8xf32> to vector<2x1x8xf32>
    %cst_61 = arith.constant 6.400000e+01 : f32
    %42 = vector.broadcast %cst_61 : f32 to vector<2x1x8xf32>
    %43 = arith.divf %41, %42 : vector<2x1x8xf32>
    %44 = vector.broadcast %43 : vector<2x1x8xf32> to vector<2x64x8xf32>
    %45 = arith.subf %39, %44 : vector<2x64x8xf32>
    %46 = arith.mulf %45, %45 : vector<2x64x8xf32>
    %cst_62 = arith.constant dense<0.000000e+00> : vector<2x8xf32>
    %47 = vector.multi_reduction <add>, %46, %cst_62 [1] : vector<2x64x8xf32> to vector<2x8xf32>
    %48 = vector.shape_cast %47 : vector<2x8xf32> to vector<2x1x8xf32>
    %cst_63 = arith.constant 6.400000e+01 : f32
    %49 = vector.broadcast %cst_63 : f32 to vector<2x1x8xf32>
    %50 = arith.divf %48, %49 : vector<2x1x8xf32>
    %51 = vector.broadcast %43 : vector<2x1x8xf32> to vector<2x64x8xf32>
    %52 = arith.subf %39, %51 : vector<2x64x8xf32>
    %cst_64 = arith.constant 9.99999974E-6 : f32
    %53 = vector.broadcast %cst_64 : f32 to vector<2x1x8xf32>
    %54 = arith.addf %50, %53 : vector<2x1x8xf32>
    %55 = math.rsqrt %54 : vector<2x1x8xf32>
    %56 = vector.broadcast %55 : vector<2x1x8xf32> to vector<2x64x8xf32>
    %57 = arith.mulf %52, %56 : vector<2x64x8xf32>
    %cst_65 = arith.constant 0.000000e+00 : f32
    %58 = vector.broadcast %cst_65 : f32 to vector<2x64x8xf32>
    %59 = arith.cmpf oge, %57, %58 : vector<2x64x8xf32>
    %cst_66 = arith.constant 0.00999999977 : f32
    %60 = vector.broadcast %cst_66 : f32 to vector<2x64x8xf32>
    %61 = arith.mulf %60, %57 : vector<2x64x8xf32>
    %62 = arith.select %59, %57, %61 : vector<2x64x8xi1>, vector<2x64x8xf32>
    %63 = vector.shape_cast %62 : vector<2x64x8xf32> to vector<128x8xf32>
    %64 = vector.shape_cast %63 : vector<128x8xf32> to vector<2x8x8x8xf32>
    %c0_67 = arith.constant 0 : index
    %c1_68 = arith.constant 1 : index
    %c1_69 = arith.constant 1 : index
    %c0_70 = arith.constant 0 : index
    %65 = vector.load %arg7[%c0_67, %c1_68, %c1_69, %c0_70] : memref<2x10x10x8xf32, #tpu.memory_space<vmem>>, vector<2x8x8x8xf32>
    tpu.vector_store %arg7[%c0_67, %c1_68, %c1_69, %c0_70], %64 {strides = array<i32>} : memref<2x10x10x8xf32, #tpu.memory_space<vmem>>, vector<2x8x8x8xf32>,
    %c0_71 = arith.constant 0 : index
    %c0_72 = arith.constant 0 : index
    %c0_73 = arith.constant 0 : index
    %c0_74 = arith.constant 0 : index
    %66 = vector.load %arg7[%c0_71, %c0_72, %c0_73, %c0_74] : memref<2x10x10x8xf32, #tpu.memory_space<vmem>>, vector<2x8x8x8xf32>
    %67 = vector.shape_cast %66 : vector<2x8x8x8xf32> to vector<128x8xf32>
    %c0_75 = arith.constant 0 : index
    %c0_76 = arith.constant 0 : index
    %c1_77 = arith.constant 1 : index
    %c0_78 = arith.constant 0 : index
    %68 = vector.load %arg7[%c0_75, %c0_76, %c1_77, %c0_78] : memref<2x10x10x8xf32, #tpu.memory_space<vmem>>, vector<2x8x8x8xf32>
    %69 = vector.shape_cast %68 : vector<2x8x8x8xf32> to vector<128x8xf32>
    %c0_79 = arith.constant 0 : index
    %c0_80 = arith.constant 0 : index
    %c2_81 = arith.constant 2 : index
    %c0_82 = arith.constant 0 : index
    %70 = vector.load %arg7[%c0_79, %c0_80, %c2_81, %c0_82] : memref<2x10x10x8xf32, #tpu.memory_space<vmem>>, vector<2x8x8x8xf32>
    %71 = vector.shape_cast %70 : vector<2x8x8x8xf32> to vector<128x8xf32>
    %c0_83 = arith.constant 0 : index
    %c1_84 = arith.constant 1 : index
    %c0_85 = arith.constant 0 : index
    %c0_86 = arith.constant 0 : index
    %72 = vector.load %arg7[%c0_83, %c1_84, %c0_85, %c0_86] : memref<2x10x10x8xf32, #tpu.memory_space<vmem>>, vector<2x8x8x8xf32>
    %73 = vector.shape_cast %72 : vector<2x8x8x8xf32> to vector<128x8xf32>
    %c0_87 = arith.constant 0 : index
    %c1_88 = arith.constant 1 : index
    %c1_89 = arith.constant 1 : index
    %c0_90 = arith.constant 0 : index
    %74 = vector.load %arg7[%c0_87, %c1_88, %c1_89, %c0_90] : memref<2x10x10x8xf32, #tpu.memory_space<vmem>>, vector<2x8x8x8xf32>
    %75 = vector.shape_cast %74 : vector<2x8x8x8xf32> to vector<128x8xf32>
    %c0_91 = arith.constant 0 : index
    %c1_92 = arith.constant 1 : index
    %c2_93 = arith.constant 2 : index
    %c0_94 = arith.constant 0 : index
    %76 = vector.load %arg7[%c0_91, %c1_92, %c2_93, %c0_94] : memref<2x10x10x8xf32, #tpu.memory_space<vmem>>, vector<2x8x8x8xf32>
    %77 = vector.shape_cast %76 : vector<2x8x8x8xf32> to vector<128x8xf32>
    %c0_95 = arith.constant 0 : index
    %c2_96 = arith.constant 2 : index
    %c0_97 = arith.constant 0 : index
    %c0_98 = arith.constant 0 : index
    %78 = vector.load %arg7[%c0_95, %c2_96, %c0_97, %c0_98] : memref<2x10x10x8xf32, #tpu.memory_space<vmem>>, vector<2x8x8x8xf32>
    %79 = vector.shape_cast %78 : vector<2x8x8x8xf32> to vector<128x8xf32>
    %c0_99 = arith.constant 0 : index
    %c2_100 = arith.constant 2 : index
    %c1_101 = arith.constant 1 : index
    %c0_102 = arith.constant 0 : index
    %80 = vector.load %arg7[%c0_99, %c2_100, %c1_101, %c0_102] : memref<2x10x10x8xf32, #tpu.memory_space<vmem>>, vector<2x8x8x8xf32>
    %81 = vector.shape_cast %80 : vector<2x8x8x8xf32> to vector<128x8xf32>
    %c0_103 = arith.constant 0 : index
    %c2_104 = arith.constant 2 : index
    %c2_105 = arith.constant 2 : index
    %c0_106 = arith.constant 0 : index
    %82 = vector.load %arg7[%c0_103, %c2_104, %c2_105, %c0_106] : memref<2x10x10x8xf32, #tpu.memory_space<vmem>>, vector<2x8x8x8xf32>
    %83 = vector.shape_cast %82 : vector<2x8x8x8xf32> to vector<128x8xf32>
    %84 = tpu.concatenate %67, %69, %71, %73, %75, %77, %79, %81, %83 in 1 : vector<128x8xf32>, vector<128x8xf32>, vector<128x8xf32>, vector<128x8xf32>, vector<128x8xf32>, vector<128x8xf32>, vector<128x8xf32>, vector<128x8xf32>, vector<128x8xf32> -> vector<128x72xf32>
    %c0_107 = arith.constant 0 : index
    %c0_108 = arith.constant 0 : index
    %85 = vector.load %arg2[%c0_107, %c0_108] : memref<72x8xf32, #tpu.memory_space<vmem>>, vector<72x8xf32>
    %cst_109 = arith.constant dense<0.000000e+00> : vector<128x8xf32>
    %86 = tpu.matmul %84, %85, %cst_109 {dimension_numbers = #tpu.dot_dimension_numbers<[1], [0], [0], [1], [0, 0, 1, 1], [], []>} : vector<128x72xf32>, vector<72x8xf32>, vector<128x8xf32> -> vector<128x8xf32>
    %87 = vector.shape_cast %86 : vector<128x8xf32> to vector<2x64x8xf32>
    %cst_110 = arith.constant dense<0.000000e+00> : vector<2x8xf32>
    %88 = vector.multi_reduction <add>, %87, %cst_110 [1] : vector<2x64x8xf32> to vector<2x8xf32>
    %89 = vector.shape_cast %88 : vector<2x8xf32> to vector<2x1x8xf32>
    %cst_111 = arith.constant 6.400000e+01 : f32
    %90 = vector.broadcast %cst_111 : f32 to vector<2x1x8xf32>
    %91 = arith.divf %89, %90 : vector<2x1x8xf32>
    %92 = vector.broadcast %91 : vector<2x1x8xf32> to vector<2x64x8xf32>
    %93 = arith.subf %87, %92 : vector<2x64x8xf32>
    %94 = arith.mulf %93, %93 : vector<2x64x8xf32>
    %cst_112 = arith.constant dense<0.000000e+00> : vector<2x8xf32>
    %95 = vector.multi_reduction <add>, %94, %cst_112 [1] : vector<2x64x8xf32> to vector<2x8xf32>
    %96 = vector.shape_cast %95 : vector<2x8xf32> to vector<2x1x8xf32>
    %cst_113 = arith.constant 6.400000e+01 : f32
    %97 = vector.broadcast %cst_113 : f32 to vector<2x1x8xf32>
    %98 = arith.divf %96, %97 : vector<2x1x8xf32>
    %99 = vector.broadcast %91 : vector<2x1x8xf32> to vector<2x64x8xf32>
    %100 = arith.subf %87, %99 : vector<2x64x8xf32>
    %cst_114 = arith.constant 9.99999974E-6 : f32
    %101 = vector.broadcast %cst_114 : f32 to vector<2x1x8xf32>
    %102 = arith.addf %98, %101 : vector<2x1x8xf32>
    %103 = math.rsqrt %102 : vector<2x1x8xf32>
    %104 = vector.broadcast %103 : vector<2x1x8xf32> to vector<2x64x8xf32>
    %105 = arith.mulf %100, %104 : vector<2x64x8xf32>
    %cst_115 = arith.constant 0.000000e+00 : f32
    %106 = vector.broadcast %cst_115 : f32 to vector<2x64x8xf32>
    %107 = arith.cmpf oge, %105, %106 : vector<2x64x8xf32>
    %cst_116 = arith.constant 0.00999999977 : f32
    %108 = vector.broadcast %cst_116 : f32 to vector<2x64x8xf32>
    %109 = arith.mulf %108, %105 : vector<2x64x8xf32>
    %110 = arith.select %107, %105, %109 : vector<2x64x8xi1>, vector<2x64x8xf32>
    %111 = vector.shape_cast %110 : vector<2x64x8xf32> to vector<128x8xf32>
    %c0_117 = arith.constant 0 : index
    %c0_118 = arith.constant 0 : index
    %112 = vector.load %arg3[%c0_117, %c0_118] : memref<8x16xf32, #tpu.memory_space<vmem>>, vector<8x16xf32>
    %cst_119 = arith.constant dense<0.000000e+00> : vector<128x16xf32>
    %113 = tpu.matmul %111, %112, %cst_119 {dimension_numbers = #tpu.dot_dimension_numbers<[1], [0], [0], [1], [0, 0, 1, 1], [], []>} : vector<128x8xf32>, vector<8x16xf32>, vector<128x16xf32> -> vector<128x16xf32>
    %c0_120 = arith.constant 0 : index
    %c0_121 = arith.constant 0 : index
    %114 = vector.load %arg4[%c0_120, %c0_121] : memref<1x16xf32, #tpu.memory_space<vmem>>, vector<1x16xf32>
    %115 = vector.broadcast %114 : vector<1x16xf32> to vector<128x16xf32>
    %116 = arith.addf %113, %115 : vector<128x16xf32>
    %117 = tpu.transpose %116, [1, 0] : vector<128x16xf32> -> vector<16x128xf32>
    %c0_122 = arith.constant 0 : index
    %c0_123 = arith.constant 0 : index
    %118 = vector.load %arg5[%c0_122, %c0_123] : memref<16x128xf32, #tpu.memory_space<vmem>>, vector<16x128xf32>
    tpu.vector_store %arg5[%c0_122, %c0_123], %117 {strides = array<i32>} : memref<16x128xf32, #tpu.memory_space<vmem>>, vector<16x128xf32>,
    return
  }
}

</mosaic_0001>

<bundles_post_ra>
// kernel: tpu_custom_call.1
= control target key start
LH: loop header
LB: loop body
LE: loop exit
PB: predicated region body
PF: predicated region fallthrough
CT: control target
= control target key end

     0   :  { %vm63_vm0 = vcmask 31744   ;;  %vm65_vm1 = vcmask 25600   ;;  %v2716_v6 = vmov 0.0   ;;  %s4258_s0 = inlined_call_operand.vmem [shape: f32[4,4,128], index: 0, kind: input, shape index: {}]   ;;  %s4259_s1 = inlined_call_operand.vmem [shape: f32[36,8], index: 1, kind: input, shape index: {}]   ;;  %s4260_s2 = inlined_call_operand.vmem [shape: f32[72,8], index: 2, kind: input, shape index: {}]   ;;  %s4261_s3 = inlined_call_operand.vmem [shape: f32[8,16], index: 3, kind: input, shape index: {}]   ;;  %s4262_s4 = inlined_call_operand.vmem [shape: f32[1,16], index: 4, kind: input, shape index: {}]   ;;  %s4263_s5 = inlined_call_operand.hbm [shape: f32[16,128], index: 5, kind: output, shape index: {}]  }
   0x1   :  { %v21_v0 = vld [vmem:[%s4258_s0] sm:$0xf]  ;;  %v2596_v1 = vld [vmem:[%s4258_s0 + $0x4] sm:$0xf]  ;;  %v2597_v2 = vld [vmem:[%s4258_s0 + $0x8] sm:$0xf] }
   0x2   :  { %v24_v3 = vmax.f32 %v21_v0, %v2596_v1  ;;  %v2598_v4 = vld [vmem:[%s4258_s0 + $0xc] sm:$0xf]  ;;  %67 = vst.msk [vmem:[#allocation2 + $0x10] sm:$0xff] %vm63_vm0, %v2716_v6 }
   0x3   :  { %v29_v5 = vmax.f32 %v2597_v2, %v2598_v4 }
   0x4   :  { %10 = vsyncpa [#allocation5], 0  ;;  %68 = vst.msk [vmem:[#allocation2 + $0x18] sm:$0x3] %vm65_vm1, %v2716_v6  ;;  %s2717_s0 = smov 8   ;;  %s2718_s26 = smov 16  }
   0x5   :  { %v30_v7 = vmax.f32 %v24_v3, %v29_v5  ;;  %64 = vst.msk [vmem:[#allocation2] sm:$0xff] %vm63_vm0, %v2716_v6  ;;  %s2719_s27 = smov 12   ;;  %s2720_s28 = smov 20   ;;  %vm105_vm2 = vcmask 64512   ;;  %v959_v63 = vld [vmem:[%s4259_s1 + $0x20] sm:$0xf] }
   0x6   :  { %66 = vst.msk [vmem:[#allocation2 + $0x8] sm:$0x3] %vm65_vm1, %v2716_v6  ;;  %s2721_s29 = smov 4   ;;  %s2722_s30 = smov 24   ;;  %vm1009_vm3 = vcmask 1043456   ;;  %v958_v0 = vld [vmem:[%s4259_s1 + $0x18] sm:$0xff] }
   0x7   :  { %31 = vxpose.xlu0.b32.start.end [1/1] (short) %v30_v7, 128  ;;  %69 = vst.msk [vmem:[#allocation2 + $0x20] sm:$0xff] %vm63_vm0, %v2716_v6  ;;  %s2723_s6 = smov 28   ;;  %s2724_s7 = smov 32   ;;  %2599 = vmatpush.msk.msra.mxu0 %vm1009_vm3, %v959_v63  ;;  %v957_v3 = vld [vmem:[%s4259_s1 + $0x10] sm:$0xff]  ;;  %v956_v4 = vld [vmem:[%s4259_s1 + $0x8] sm:$0xff]  ;;  %vm853_vm4 = vcmask 97280  }
   0x8   :  { %70 = vst.msk [vmem:[#allocation2 + $0x28] sm:$0x3] %vm65_vm1, %v2716_v6  ;;  %2648 = vmatpush.msk.msra.mxu3 %vm1009_vm3, %v959_v63  ;;  %vm870_vm5 = vcmask 130048   ;;  %vm887_vm6 = vcmask 162816   ;;  %vm4264_vm7 = vcmask 195584   ;;  %vm921_vm8 = vcmask 228352  }
   0x9   :  { %71 = vst.msk [vmem:[#allocation2 + $0x30] sm:$0xff] %vm63_vm0, %v2716_v6  ;;  %1025 = vmatpush.msra.mxu0 %v958_v0  ;;  %vm960_vm9 = vcmask 293888   ;;  %vm938_vm10 = vcmask 261120   ;;  %vm107_vm11 = vcmask 58368   ;;  %s2727_s18 = smov 64   ;;  %s2728_s19 = smov 56  }
   0xa   :  { %72 = vst.msk [vmem:[#allocation2 + $0x38] sm:$0x3] %vm65_vm1, %v2716_v6  ;;  %2649 = vmatpush.msra.mxu3 %v958_v0  ;;  %s2729_s20 = smov 48   ;;  %s2584_s17 = sshll.u32 %s4263_s5, 4  ;;  %s2585_s17 = int_to_ptr.hbm [resolvable:$true] %s2584_s17 }
   0xb   :  { %73 = vst.msk [vmem:[#allocation2 + $0x40] sm:$0xff] %vm63_vm0, %v2716_v6  ;;  %1026 = vmatpush.msra.mxu0 %v957_v3 }
   0xc   :  { %74 = vst.msk [vmem:[#allocation2 + $0x48] sm:$0x3] %vm65_vm1, %v2716_v6  ;;  %2650 = vmatpush.msra.mxu3 %v957_v3 }
   0xd   :  { %75 = vst.msk [vmem:[#allocation2 + $0x50] sm:$0xff] %vm63_vm0, %v2716_v6  ;;  %v196_v8 = vld [vmem:[#allocation2 + $0x2] sm:$0xff]  ;;  %1027 = vmatpush.msra.mxu0 %v956_v4 }
   0xe   :  { %76 = vst.msk [vmem:[#allocation2 + $0x58] sm:$0x3] %vm65_vm1, %v2716_v6  ;;  %389 = vrot.lane.b32.xlu1 %v196_v8, %s2717_s0  ;;  %v180_v24 = vld [vmem:[#allocation2 + $0x1] sm:$0xff]  ;;  %2651 = vmatpush.msra.mxu3 %v956_v4 }
   0xf   :  { %77 = vst.msk [vmem:[#allocation2 + $0x60] sm:$0xff] %vm63_vm0, %v2716_v6  ;;  %v955_v8 = vld [vmem:[%s4259_s1] sm:$0xff]  ;;  %s2726_s1 = smov 40  }
  0x10   :  { %78 = vst.msk [vmem:[#allocation2 + $0x68] sm:$0x3] %vm65_vm1, %v2716_v6  ;;  %1028 = vmatpush.msra.mxu0 %v955_v8  ;;  %2652 = vmatpush.msra.mxu3 %v955_v8 }
  0x11   :  { %79 = vst.msk [vmem:[#allocation2 + $0x70] sm:$0xff] %vm63_vm0, %v2716_v6 }
  0x12   :  { %80 = vst.msk [vmem:[#allocation2 + $0x78] sm:$0x3] %vm65_vm1, %v2716_v6 }
  0x13   :  { %81 = vst.msk [vmem:[#allocation2 + $0x80] sm:$0xff] %vm63_vm0, %v2716_v6 }
  0x14   :  { %82 = vst.msk [vmem:[#allocation2 + $0x88] sm:$0x3] %vm65_vm1, %v2716_v6 }
  0x15   :  { %83 = vst.msk [vmem:[#allocation2 + $0x90] sm:$0xff] %vm63_vm0, %v2716_v6 }
  0x16   :  { %84 = vst.msk [vmem:[#allocation2 + $0x98] sm:$0x3] %vm65_vm1, %v2716_v6 }
  0x17   :  { %85 = vst.msk [vmem:[#allocation2 + $0xa0] sm:$0xff] %vm63_vm0, %v2716_v6 }
  0x18   :  { %86 = vst.msk [vmem:[#allocation2 + $0xa8] sm:$0x3] %vm65_vm1, %v2716_v6 }
  0x19   :  { %87 = vst.msk [vmem:[#allocation2 + $0xb0] sm:$0xff] %vm63_vm0, %v2716_v6 }
  0x1a   :  { %88 = vst.msk [vmem:[#allocation2 + $0xb8] sm:$0x3] %vm65_vm1, %v2716_v6 }
  0x1b   :  { %89 = vst.msk [vmem:[#allocation2 + $0xc0] sm:$0xff] %vm63_vm0, %v2716_v6 }
  0x1c   :  { %90 = vst.msk [vmem:[#allocation2 + $0xc8] sm:$0x3] %vm65_vm1, %v2716_v6  ;;  %v268_v28 = vld [vmem:[#allocation2 + $0x90] sm:$0xff] }
  0x1d   :  { %91 = vst.msk [vmem:[#allocation2 + $0xd0] sm:$0xff] %vm63_vm0, %v2716_v6 }
  0x1e   :  { %92 = vst.msk [vmem:[#allocation2 + $0xd8] sm:$0x3] %vm65_vm1, %v2716_v6 }
  0x1f   :  { %93 = vst.msk [vmem:[#allocation2 + $0xe0] sm:$0xff] %vm63_vm0, %v2716_v6  ;;  %v188_v31 = vld [vmem:[#allocation2 + $0xa1] sm:$0xff] }
  0x20   :  { %94 = vst.msk [vmem:[#allocation2 + $0xe8] sm:$0x3] %vm65_vm1, %v2716_v6 }
  0x21   :  { %95 = vst.msk [vmem:[#allocation2 + $0xf0] sm:$0xff] %vm63_vm0, %v2716_v6 }
  0x22   :  { %96 = vst.msk [vmem:[#allocation2 + $0xf8] sm:$0x3] %vm65_vm1, %v2716_v6 }
  0x23   :  { %97 = vst.msk [vmem:[#allocation2 + $0x100] sm:$0xff] %vm63_vm0, %v2716_v6 }
  0x24   :  { %98 = vst.msk [vmem:[#allocation2 + $0x108] sm:$0x3] %vm65_vm1, %v2716_v6 }
  0x25   :  { %99 = vst.msk [vmem:[#allocation2 + $0x110] sm:$0xff] %vm63_vm0, %v2716_v6 }
  0x26   :  { %100 = vst.msk [vmem:[#allocation2 + $0x118] sm:$0x3] %vm65_vm1, %v2716_v6 }
  0x27   :  { %101 = vst.msk [vmem:[#allocation2 + $0x120] sm:$0xff] %vm63_vm0, %v2716_v6 }
  0x28   :  { %102 = vst.msk [vmem:[#allocation2 + $0x128] sm:$0x3] %vm65_vm1, %v2716_v6 }
  0x29   :  { %103 = vst.msk [vmem:[#allocation2 + $0x130] sm:$0xff] %vm63_vm0, %v2716_v6 }
  0x2a   :  { %104 = vst.msk [vmem:[#allocation2 + $0x138] sm:$0x3] %vm65_vm1, %v2716_v6 }
  0x2b   :  { %106 = vst.msk [vmem:[#allocation3] sm:$0xff] %vm105_vm2, %v2716_v6 }
  0x2c   :  { %109 = vst.msk [vmem:[#allocation3 + $0x10] sm:$0xff] %vm105_vm2, %v2716_v6 }
  0x2d   :  { %111 = vst.msk [vmem:[#allocation3 + $0x20] sm:$0xff] %vm105_vm2, %v2716_v6 }
  0x2e   :  { %113 = vst.msk [vmem:[#allocation3 + $0x30] sm:$0xff] %vm105_vm2, %v2716_v6 }
  0x2f   :  { %115 = vst.msk [vmem:[#allocation3 + $0x40] sm:$0xff] %vm105_vm2, %v2716_v6 }
  0x30   :  { %117 = vst.msk [vmem:[#allocation3 + $0x50] sm:$0xff] %vm105_vm2, %v2716_v6 }
  0x31   :  { %119 = vst.msk [vmem:[#allocation3 + $0x60] sm:$0xff] %vm105_vm2, %v2716_v6 }
  0x32   :  { %121 = vst.msk [vmem:[#allocation3 + $0x70] sm:$0xff] %vm105_vm2, %v2716_v6 }
  0x33   :  { %123 = vst.msk [vmem:[#allocation3 + $0x80] sm:$0xff] %vm105_vm2, %v2716_v6 }
  0x34   :  { %125 = vst.msk [vmem:[#allocation3 + $0x90] sm:$0xff] %vm105_vm2, %v2716_v6 }
  0x35   :  { %127 = vst.msk [vmem:[#allocation3 + $0xa0] sm:$0xff] %vm105_vm2, %v2716_v6 }
  0x36   :  { %129 = vst.msk [vmem:[#allocation3 + $0xb0] sm:$0xff] %vm105_vm2, %v2716_v6 }
  0x37   :  { %131 = vst.msk [vmem:[#allocation3 + $0xc0] sm:$0xff] %vm105_vm2, %v2716_v6 }
  0x38   :  { %133 = vst.msk [vmem:[#allocation3 + $0xd0] sm:$0xff] %vm105_vm2, %v2716_v6 }
  0x39   :  { %135 = vst.msk [vmem:[#allocation3 + $0xe0] sm:$0xff] %vm105_vm2, %v2716_v6 }
  0x3a   :  { %137 = vst.msk [vmem:[#allocation3 + $0xf0] sm:$0xff] %vm105_vm2, %v2716_v6 }
  0x3b   :  { %139 = vst.msk [vmem:[#allocation3 + $0x100] sm:$0xff] %vm105_vm2, %v2716_v6 }
  0x3c   :  { %141 = vst.msk [vmem:[#allocation3 + $0x110] sm:$0xff] %vm105_vm2, %v2716_v6 }
  0x3d   :  { %143 = vst.msk [vmem:[#allocation3 + $0x120] sm:$0xff] %vm105_vm2, %v2716_v6 }
  0x3e   :  { %145 = vst.msk [vmem:[#allocation3 + $0x130] sm:$0xff] %vm105_vm2, %v2716_v6 }
  0x3f   :  { %110 = vst.msk [vmem:[#allocation3 + $0x18] sm:$0x3] %vm107_vm11, %v2716_v6 }
  0x40   :  { %112 = vst.msk [vmem:[#allocation3 + $0x28] sm:$0x3] %vm107_vm11, %v2716_v6 }
  0x41   :  { %114 = vst.msk [vmem:[#allocation3 + $0x38] sm:$0x3] %vm107_vm11, %v2716_v6 }
  0x42   :  { %116 = vst.msk [vmem:[#allocation3 + $0x48] sm:$0x3] %vm107_vm11, %v2716_v6 }
  0x43   :  { %118 = vst.msk [vmem:[#allocation3 + $0x58] sm:$0x3] %vm107_vm11, %v2716_v6 }
  0x44   :  { %120 = vst.msk [vmem:[#allocation3 + $0x68] sm:$0x3] %vm107_vm11, %v2716_v6 }
  0x45   :  { %122 = vst.msk [vmem:[#allocation3 + $0x78] sm:$0x3] %vm107_vm11, %v2716_v6 }
  0x46   :  { %124 = vst.msk [vmem:[#allocation3 + $0x88] sm:$0x3] %vm107_vm11, %v2716_v6 }
  0x47   :  { %108 = vst.msk [vmem:[#allocation3 + $0x8] sm:$0x3] %vm107_vm11, %v2716_v6 }
  0x48   :  { %126 = vst.msk [vmem:[#allocation3 + $0x98] sm:$0x3] %vm107_vm11, %v2716_v6 }
  0x49   :  { %128 = vst.msk [vmem:[#allocation3 + $0xa8] sm:$0x3] %vm107_vm11, %v2716_v6 }
  0x4a   :  { %130 = vst.msk [vmem:[#allocation3 + $0xb8] sm:$0x3] %vm107_vm11, %v2716_v6 }
  0x4b   :  { %132 = vst.msk [vmem:[#allocation3 + $0xc8] sm:$0x3] %vm107_vm11, %v2716_v6 }
  0x4c   :  { %134 = vst.msk [vmem:[#allocation3 + $0xd8] sm:$0x3] %vm107_vm11, %v2716_v6 }
  0x4d   :  { %136 = vst.msk [vmem:[#allocation3 + $0xe8] sm:$0x3] %vm107_vm11, %v2716_v6 }
  0x4e   :  { %138 = vst.msk [vmem:[#allocation3 + $0xf8] sm:$0x3] %vm107_vm11, %v2716_v6 }
  0x4f   :  { %140 = vst.msk [vmem:[#allocation3 + $0x108] sm:$0x3] %vm107_vm11, %v2716_v6 }
  0x50   :  { %142 = vst.msk [vmem:[#allocation3 + $0x118] sm:$0x3] %vm107_vm11, %v2716_v6 }
  0x51   :  { %144 = vst.msk [vmem:[#allocation3 + $0x128] sm:$0x3] %vm107_vm11, %v2716_v6 }
  0x52   :  { %146 = vst.msk [vmem:[#allocation3 + $0x138] sm:$0x3] %vm107_vm11, %v2716_v6 }
  0x80   :  { %v2958_v44 = vpop.permute.xlu1 %389 }
  0xab   :  { %v47_v9 = vpop.trf.xlu0 }
  0xac   :  { %148 = vst.msk [vmem:[#allocation2 + $0x11] sm:$0xff] %vm63_vm0, %v47_v9 }
  0xb3   :  { %v48_v10 = vpop.trf.xlu0  ;;  %v228_v11 = vld [vmem:[#allocation2 + $0x11] sm:$0xff] }
  0xb4   :  { %v2856_v12 = vld [vmem:[#allocation2 + $0x10] sm:$0xff]  ;;  %149 = vst.msk [vmem:[#allocation2 + $0x21] sm:$0xff] %vm63_vm0, %v48_v10  ;;  %517 = vrot.lane.b32.xlu2 %v228_v11, %s2718_s26 }
  0xb5   :  { %453 = vrot.lane.b32.xlu1 %v2856_v12, %s2719_s27  ;;  %v244_v14 = vld [vmem:[#allocation2 + $0x12] sm:$0xff] }
  0xbb   :  { %v49_v13 = vpop.trf.xlu0  ;;  %v2865_v15 = vld [vmem:[#allocation2 + $0x20] sm:$0xff] }
  0xbc   :  { %150 = vst.msk [vmem:[#allocation2 + $0x31] sm:$0xff] %vm63_vm0, %v49_v13  ;;  %581 = vrot.lane.b32.xlu2 %v244_v14, %s2720_s28  ;;  %v277_v18 = vld [vmem:[#allocation2 + $0x21] sm:$0xff] }
  0xbd   :  { %391 = vrot.lane.b32.xlu1 %v244_v14, %s2717_s0  ;;  %v293_v19 = vld [vmem:[#allocation2 + $0x22] sm:$0xff] }
  0xc3   :  { %v50_v16 = vpop.trf.xlu0  ;;  %v2881_v22 = vld [vmem:[#allocation2 + $0x30] sm:$0xff] }
  0xc4   :  { %151 = vst.msk [vmem:[#allocation2 + $0x41] sm:$0xff] %vm63_vm0, %v50_v16  ;;  %327 = vrot.lane.b32.xlu2 %v228_v11, %s2721_s29  ;;  %v278_v26 = vld [vmem:[#allocation2 + $0x31] sm:$0xff] }
  0xc5   :  { %645 = vrot.lane.b32.xlu1 %v2865_v15, %s2722_s30  ;;  %v294_v27 = vld [vmem:[#allocation2 + $0x32] sm:$0xff] }
  0xcb   :  { %v51_v17 = vpop.trf.xlu0  ;;  %v2896_v30 = vld [vmem:[#allocation2 + $0x40] sm:$0xff] }
  0xcc   :  { %152 = vst.msk [vmem:[#allocation2 + $0x51] sm:$0xff] %vm63_vm0, %v51_v17  ;;  %709 = vrot.lane.b32.xlu2 %v277_v18, %s2723_s6  ;;  %v279_v35 = vld [vmem:[#allocation2 + $0x41] sm:$0xff] }
  0xcd   :  { %773 = vrot.lane.b32.xlu1 %v293_v19, %s2724_s7  ;;  %v295_v36 = vld [vmem:[#allocation2 + $0x42] sm:$0xff] }
  0xd3   :  { %v52_v20 = vpop.trf.xlu0  ;;  %v2945_v42 = vld [vmem:[#allocation2 + $0x50] sm:$0xff] }
  0xd4   :  { %153 = vst.msk [vmem:[#allocation2 + $0x61] sm:$0xff] %vm63_vm0, %v52_v20  ;;  %455 = vrot.lane.b32.xlu2 %v2865_v15, %s2719_s27  ;;  %v280_v47 = vld [vmem:[#allocation2 + $0x51] sm:$0xff] }
  0xd5   :  { %519 = vrot.lane.b32.xlu1 %v277_v18, %s2718_s26  ;;  %v296_v48 = vld [vmem:[#allocation2 + $0x52] sm:$0xff] }
  0xdb   :  { %v53_v21 = vpop.trf.xlu0  ;;  %v3010_v59 = vld [vmem:[#allocation2 + $0x60] sm:$0xff] }
  0xdc   :  { %154 = vst.msk [vmem:[#allocation2 + $0x71] sm:$0xff] %vm63_vm0, %v53_v21  ;;  %583 = vrot.lane.b32.xlu2 %v293_v19, %s2720_s28  ;;  %v3030_v1 = vld [vmem:[#allocation2 + $0x61] sm:$0xff] }
  0xdd   :  { %393 = vrot.lane.b32.xlu1 %v293_v19, %s2717_s0  ;;  %v3032_v2 = vld [vmem:[#allocation2 + $0x62] sm:$0xff] }
  0xe3   :  { %v54_v23 = vpop.trf.xlu0  ;;  %v3063_v16 = vld [vmem:[#allocation2 + $0x70] sm:$0xff] }
  0xe4   :  { %155 = vst.msk [vmem:[#allocation2 + $0x81] sm:$0xff] %vm63_vm0, %v54_v23  ;;  %329 = vrot.lane.b32.xlu2 %v277_v18, %s2721_s29  ;;  %v164_v18 = vld [vmem:[#allocation2] sm:$0xff] }
  0xe5   :  { %647 = vrot.lane.b32.xlu1 %v2881_v22, %s2722_s30 }
  0xeb   :  { %v55_v25 = vpop.trf.xlu0 }
  0xec   :  { %156 = vst.msk [vmem:[#allocation2 + $0xb1] sm:$0xff] %vm63_vm0, %v55_v25  ;;  %711 = vrot.lane.b32.xlu2 %v278_v26, %s2723_s6 }
  0xed   :  { %775 = vrot.lane.b32.xlu1 %v294_v27, %s2724_s7  ;;  %325 = vrot.lane.b32.xlu0 %v180_v24, %s2721_s29 }
  0xf3   :  { %v56_v29 = vpop.trf.xlu0  ;;  %v2903_v33 = vld [vmem:[#allocation2 + $0xb0] sm:$0xff] }
  0xf4   :  { %157 = vst.msk [vmem:[#allocation2 + $0xc1] sm:$0xff] %vm63_vm0, %v56_v29  ;;  %457 = vrot.lane.b32.xlu2 %v2881_v22, %s2719_s27 }
  0xf5   :  { %521 = vrot.lane.b32.xlu1 %v278_v26, %s2718_s26  ;;  %659 = vrot.lane.b32.xlu0 %v268_v28, %s2722_s30 }
  0xfb   :  { %v57_v32 = vpop.trf.xlu0  ;;  %v2949_v43 = vld [vmem:[#allocation2 + $0xc0] sm:$0xff] }
  0xfc   :  { %158 = vst.msk [vmem:[#allocation2 + $0xd1] sm:$0xff] %vm63_vm0, %v57_v32  ;;  %585 = vrot.lane.b32.xlu2 %v294_v27, %s2720_s28  ;;  %v3013_v60 = vld [vmem:[#allocation2 + $0xc1] sm:$0xff]  ;;  %v298_v32 = vld [vmem:[#allocation2 + $0x72] sm:$0xff] }
  0xfd   :  { %649 = vrot.lane.b32.xlu1 %v2896_v30, %s2722_s30  ;;  %341 = vrot.lane.b32.xlu0 %v188_v31, %s2721_s29  ;;  %v282_v31 = vld [vmem:[#allocation2 + $0x71] sm:$0xff] }
 0x103   :  { %v58_v34 = vpop.trf.xlu0  ;;  %v3051_v9 = vld [vmem:[#allocation2 + $0xd1] sm:$0xff] }
 0x104   :  { %159 = vst.msk [vmem:[#allocation2 + $0xe1] sm:$0xff] %vm63_vm0, %v58_v34  ;;  %713 = vrot.lane.b32.xlu2 %v279_v35, %s2723_s6 }
 0x105   :  { %777 = vrot.lane.b32.xlu1 %v295_v36, %s2724_s7  ;;  %469 = vrot.lane.b32.xlu0 %v2903_v33, %s2719_s27 }
 0x10b   :  { %v59_v37 = vpop.trf.xlu0 }
 0x10c   :  { %160 = vst.msk [vmem:[#allocation2 + $0xf1] sm:$0xff] %vm63_vm0, %v59_v37  ;;  %331 = vrot.lane.b32.xlu2 %v278_v26, %s2721_s29 }
 0x10d   :  { %395 = vrot.lane.b32.xlu1 %v294_v27, %s2717_s0 }
 0x10e   :  { %v2913_v38 = vpop.permute.xlu2 %517 }
 0x113   :  { %v2925_v39 = vld [vmem:[#allocation2 + $0xf0] sm:$0xff]  ;;  %v60_v40 = vpop.trf.xlu0 }
 0x114   :  { %459 = vrot.lane.b32.xlu2 %v2896_v30, %s2719_s27  ;;  %161 = vst.msk [vmem:[#allocation2 + $0x101] sm:$0xff] %vm63_vm0, %v60_v40  ;;  %477 = vrot.lane.b32.xlu0 %v2925_v39, %s2719_s27  ;;  %v2999_v55 = vld [vmem:[#allocation2 + $0xf1] sm:$0xff] }
 0x115   :  { %523 = vrot.lane.b32.xlu1 %v279_v35, %s2718_s26 }
 0x116   :  { %v2937_v41 = vpop.permute.xlu2 %581 }
 0x11b   :  { %v2976_v46 = vld [vmem:[#allocation2 + $0x100] sm:$0xff]  ;;  %v61_v54 = vpop.trf.xlu0 }
 0x11c   :  { %587 = vrot.lane.b32.xlu2 %v295_v36, %s2720_s28  ;;  %661 = vrot.lane.b32.xlu0 %v2949_v43, %s2722_s30  ;;  %v2988_v51 = vld [vmem:[#allocation2 + $0x101] sm:$0xff]  ;;  %162 = vst.msk [vmem:[#allocation2 + $0x111] sm:$0xff] %vm63_vm0, %v61_v54 }
 0x11d   :  { %651 = vrot.lane.b32.xlu1 %v2945_v42, %s2722_s30  ;;  %v3081_v27 = vld [vmem:[#allocation2 + $0x102] sm:$0xff] }
 0x11e   :  { %v2966_v45 = vpop.permute.xlu2 %327 }
 0x11f   :  { %v822_v25 = vsel %vm63_vm0, %v2856_v12, %v2966_v45 }
 0x123   :  { %v62_v58 = vpop.trf.xlu0  ;;  %v3065_v17 = vld [vmem:[#allocation2 + $0x112] sm:$0xff] }
 0x124   :  { %715 = vrot.lane.b32.xlu2 %v280_v47, %s2723_s6  ;;  %669 = vrot.lane.b32.xlu0 %v2976_v46, %s2722_s30  ;;  %163 = vst.msk [vmem:[#allocation2 + $0x121] sm:$0xff] %vm63_vm0, %v62_v58 }
 0x125   :  { %779 = vrot.lane.b32.xlu1 %v296_v48, %s2724_s7 }
 0x126   :  { %v2986_v50 = vpop.permute.xlu2 %709 }
 0x127   :  { %v2984_v49 = vpop.permute.xlu1 %453 }
 0x12c   :  { %333 = vrot.lane.b32.xlu2 %v279_v35, %s2721_s29  ;;  %733 = vrot.lane.b32.xlu0 %v2988_v51, %s2723_s6 }
 0x12d   :  { %397 = vrot.lane.b32.xlu1 %v295_v36, %s2717_s0 }
 0x12e   :  { %v2996_v53 = vpop.permute.xlu2 %455 }
 0x12f   :  { %v2994_v52 = vpop.permute.xlu1 %391 }
 0x130   :  { %v838_v28 = vsel %vm105_vm2, %v822_v25, %v2994_v52 }
 0x131   :  { %v855_v35 = vsel %vm853_vm4, %v838_v28, %v2996_v53 }
 0x134   :  { %461 = vrot.lane.b32.xlu2 %v2945_v42, %s2719_s27  ;;  %351 = vrot.lane.b32.xlu0 %v2999_v55, %s2721_s29 }
 0x135   :  { %525 = vrot.lane.b32.xlu1 %v280_v47, %s2718_s26 }
 0x136   :  { %v3008_v57 = vpop.permute.xlu2 %583 }
 0x137   :  { %v3006_v56 = vpop.permute.xlu1 %645 }
 0x13c   :  { %589 = vrot.lane.b32.xlu2 %v296_v48, %s2720_s28  ;;  %535 = vrot.lane.b32.xlu0 %v3013_v60, %s2718_s26 }
 0x13d   :  { %653 = vrot.lane.b32.xlu1 %v3010_v59, %s2722_s30 }
 0x13e   :  { %v3022_v62 = vpop.permute.xlu2 %329 }
 0x13f   :  { %v3020_v61 = vpop.permute.xlu1 %773 }
 0x144   :  { %717 = vrot.lane.b32.xlu2 %v3030_v1, %s2723_s6  ;;  %543 = vrot.lane.b32.xlu0 %v2988_v51, %s2718_s26 }
 0x145   :  { %781 = vrot.lane.b32.xlu1 %v3032_v2, %s2724_s7 }
 0x146   :  { %v3046_v7 = vpop.permute.xlu2 %711 }
 0x147   :  { %v520_v5 = vpop.permute.xlu1 %519 }
 0x148   :  { %v872_v40 = vsel %vm870_vm5, %v855_v35, %v520_v5  ;;  %v283_v5 = vld [vmem:[#allocation2 + $0x81] sm:$0xff]  ;;  %v300_v35 = vld [vmem:[#allocation2 + $0x92] sm:$0xff] }
 0x149   :  { %v889_v45 = vsel %vm887_vm6, %v872_v40, %v3008_v57 }
 0x14c   :  { %335 = vrot.lane.b32.xlu2 %v280_v47, %s2721_s29  ;;  %727 = vrot.lane.b32.xlu0 %v3051_v9, %s2723_s6  ;;  %v3108_v47 = vld [vmem:[#allocation2 + $0xd2] sm:$0xff] }
 0x14d   :  { %399 = vrot.lane.b32.xlu1 %v296_v48, %s2717_s0 }
 0x14e   :  { %v458_v11 = vpop.permute.xlu2 %457 }
 0x14f   :  { %v394_v10 = vpop.permute.xlu1 %393 }
 0x154   :  { %463 = vrot.lane.b32.xlu2 %v3010_v59, %s2719_s27  ;;  %345 = vrot.lane.b32.xlu0 %v3013_v60, %s2721_s29 }
 0x155   :  { %527 = vrot.lane.b32.xlu1 %v3030_v1, %s2718_s26 }
 0x156   :  { %v586_v14 = vpop.permute.xlu2 %585 }
 0x157   :  { %v648_v13 = vpop.permute.xlu1 %647 }
 0x15c   :  { %591 = vrot.lane.b32.xlu2 %v3032_v2, %s2720_s28  ;;  %799 = vrot.lane.b32.xlu0 %v3065_v17, %s2724_s7 }
 0x15d   :  { %655 = vrot.lane.b32.xlu1 %v3063_v16, %s2722_s30 }
 0x15e   :  { %v714_v20 = vpop.permute.xlu2 %713 }
 0x15f   :  { %v776_v19 = vpop.permute.xlu1 %775  ;;  %v326_v21 = vpop.permute.xlu0 %325 }
 0x160   :  { %v821_v23 = vsel %vm63_vm0, %v164_v18, %v326_v21 }
 0x161   :  { %v837_v24 = vsel %vm105_vm2, %v821_v23, %v2958_v44  ;;  %v823_v44 = vsel %vm63_vm0, %v2865_v15, %v3022_v62 }
 0x162   :  { %v854_v26 = vsel %vm853_vm4, %v837_v24, %v2984_v49  ;;  %v839_v48 = vsel %vm105_vm2, %v823_v44, %v394_v10  ;;  %v906_v49 = vsel %vm4264_vm7, %v889_v45, %v648_v13  ;;  %v3146_v13 = vld [vmem:[#allocation2 + $0xe0] sm:$0xff] }
 0x163   :  { %v871_v29 = vsel %vm870_vm5, %v854_v26, %v2913_v38  ;;  %v856_v15 = vsel %vm853_vm4, %v839_v48, %v458_v11  ;;  %v923_v53 = vsel %vm921_vm8, %v906_v49, %v3046_v7  ;;  %v299_v7 = vld [vmem:[#allocation2 + $0x82] sm:$0xff] }
 0x164   :  { %719 = vrot.lane.b32.xlu2 %v282_v31, %s2723_s6  ;;  %v888_v12 = vsel %vm887_vm6, %v871_v29, %v2937_v41  ;;  %417 = vrot.lane.b32.xlu0 %v3081_v27, %s2717_s0 }
 0x165   :  { %783 = vrot.lane.b32.xlu1 %v298_v32, %s2724_s7  ;;  %v905_v34 = vsel %vm4264_vm7, %v888_v12, %v3006_v56  ;;  %v940_v56 = vsel %vm938_vm10, %v923_v53, %v776_v19 }
 0x166   :  { %v332_v37 = vpop.permute.xlu2 %331  ;;  %v922_v38 = vsel %vm921_vm8, %v905_v34, %v2986_v50  ;;  %v204_v34 = vld [vmem:[#allocation2 + $0xa2] sm:$0xff] }
 0x167   :  { %v522_v36 = vpop.permute.xlu1 %521  ;;  %v939_v41 = vsel %vm938_vm10, %v922_v38, %v3020_v61  ;;  %v824_v11 = vsel %vm63_vm0, %v2881_v22, %v332_v37  ;;  %v3156_v22 = vld [vmem:[#allocation2 + $0x120] sm:$0xff] }
 0x168   :  { %2600 = vmatmul.msk.f32.vlgmr.msra.gmra.mxu0 %vm960_vm9, %v939_v41  ;;  %v873_v54 = vsel %vm870_vm5, %v856_v15, %v522_v36  ;;  %v3175_v41 = vld [vmem:[#allocation2 + $0xe1] sm:$0xff] }
 0x169   :  { %v890_v57 = vsel %vm887_vm6, %v873_v54, %v586_v14 }
 0x16c   :  { %337 = vrot.lane.b32.xlu2 %v3030_v1, %s2721_s29  ;;  %601 = vrot.lane.b32.xlu0 %v3108_v47, %s2720_s28  ;;  %v267_v1 = vld [vmem:[#allocation2 + $0x80] sm:$0xff] }
 0x16d   :  { %401 = vrot.lane.b32.xlu1 %v3032_v2, %s2717_s0  ;;  %v3134_v2 = vld [vmem:[#allocation2 + $0xe2] sm:$0xff] }
 0x16e   :  { %v460_v52 = vpop.permute.xlu2 %459 }
 0x16f   :  { %v650_v50 = vpop.permute.xlu1 %649 }
 0x170   :  { %2601 = vmatmul.msk.f32.gmra.mxu0 %vm960_vm9, %v940_v56  ;;  %v907_v58 = vsel %vm4264_vm7, %v890_v57, %v650_v50  ;;  %v252_v50 = vld [vmem:[#allocation2 + $0xb2] sm:$0xff] }
 0x171   :  { %v924_v63 = vsel %vm921_vm8, %v907_v58, %v714_v20  ;;  %v3190_v58 = vld [vmem:[#allocation2 + $0xf2] sm:$0xff] }
 0x174   :  { %465 = vrot.lane.b32.xlu2 %v3063_v16, %s2719_s27  ;;  %609 = vrot.lane.b32.xlu0 %v3065_v17, %s2720_s28 }
 0x175   :  { %529 = vrot.lane.b32.xlu1 %v282_v31, %s2718_s26 }
 0x176   :  { %v588_v62 = vpop.permute.xlu2 %587 }
 0x177   :  { %v778_v61 = vpop.permute.xlu1 %777 }
 0x178   :  { %v941_v0 = vsel %vm938_vm10, %v924_v63, %v778_v61  ;;  %v301_v63 = vld [vmem:[#allocation2 + $0xc2] sm:$0xff] }
 0x179   :  { %2602 = vmatmul.msk.f32.gmra.mxu0 %vm960_vm9, %v941_v0 }
 0x17c   :  { %593 = vrot.lane.b32.xlu2 %v298_v32, %s2720_s28  ;;  %793 = vrot.lane.b32.xlu0 %v3134_v2, %s2724_s7 }
 0x17d   :  { %657 = vrot.lane.b32.xlu1 %v267_v1, %s2722_s30 }
 0x17e   :  { %v716_v4 = vpop.permute.xlu2 %715 }
 0x17f   :  { %v396_v3 = vpop.permute.xlu1 %395 }
 0x180   :  { %v840_v14 = vsel %vm105_vm2, %v824_v11, %v396_v3 }
 0x181   :  { %v857_v18 = vsel %vm853_vm4, %v840_v14, %v460_v52  ;;  %v236_v52 = vld [vmem:[#allocation2 + $0xb1] sm:$0xff] }
 0x184   :  { %721 = vrot.lane.b32.xlu2 %v283_v5, %s2723_s6  ;;  %411 = vrot.lane.b32.xlu0 %v3108_v47, %s2717_s0 }
 0x185   :  { %785 = vrot.lane.b32.xlu1 %v299_v7, %s2724_s7 }
 0x186   :  { %v334_v10 = vpop.permute.xlu2 %333 }
 0x187   :  { %v524_v8 = vpop.permute.xlu1 %523  ;;  %v825_v38 = vsel %vm63_vm0, %v2896_v30, %v334_v10 }
 0x188   :  { %v874_v21 = vsel %vm870_vm5, %v857_v18, %v524_v8 }
 0x189   :  { %v891_v23 = vsel %vm887_vm6, %v874_v21, %v588_v62 }
 0x18c   :  { %339 = vrot.lane.b32.xlu2 %v282_v31, %s2721_s29  ;;  %475 = vrot.lane.b32.xlu0 %v3146_v13, %s2719_s27  ;;  %v284_v31 = vld [vmem:[#allocation2 + $0x91] sm:$0xff] }
 0x18d   :  { %403 = vrot.lane.b32.xlu1 %v298_v32, %s2717_s0 }
 0x18e   :  { %v462_v20 = vpop.permute.xlu2 %461 }
 0x18f   :  { %v652_v19 = vpop.permute.xlu1 %651 }
 0x190   :  { %v908_v24 = vsel %vm4264_vm7, %v891_v23, %v652_v19  ;;  %v660_v19 = vpop.permute.xlu0 %659 }
 0x191   :  { %v925_v28 = vsel %vm921_vm8, %v908_v24, %v716_v4 }
 0x194   :  { %467 = vrot.lane.b32.xlu2 %v267_v1, %s2719_s27  ;;  %483 = vrot.lane.b32.xlu0 %v3156_v22, %s2719_s27 }
 0x195   :  { %531 = vrot.lane.b32.xlu1 %v283_v5, %s2718_s26 }
 0x196   :  { %v590_v26 = vpop.permute.xlu2 %589 }
 0x197   :  { %v780_v25 = vpop.permute.xlu1 %779 }
 0x198   :  { %v942_v29 = vsel %vm938_vm10, %v925_v28, %v780_v25  ;;  %v3219_v24 = vpop.permute.xlu0 %341  ;;  %v3221_v25 = vld [vmem:[#allocation2 + $0xd0] sm:$0xff] }
 0x199   :  { %2603 = vmatmul.msk.f32.gmra.mxu0 %vm960_vm9, %v942_v29 }
 0x19c   :  { %595 = vrot.lane.b32.xlu2 %v299_v7, %s2720_s28  ;;  %667 = vrot.lane.b32.xlu0 %v2925_v39, %s2722_s30 }
 0x19d   :  { %723 = vrot.lane.b32.xlu1 %v284_v31, %s2723_s6 }
 0x19e   :  { %v718_v12 = vpop.permute.xlu2 %717 }
 0x19f   :  { %v398_v32 = vpop.permute.xlu1 %397 }
 0x1a0   :  { %v841_v40 = vsel %vm105_vm2, %v825_v38, %v398_v32  ;;  %v3228_v31 = vpop.permute.xlu0 %469 }
 0x1a1   :  { %v858_v44 = vsel %vm853_vm4, %v841_v40, %v462_v20  ;;  %v290_v40 = vld [vmem:[#allocation2 + $0x111] sm:$0xff] }
 0x1a4   :  { %787 = vrot.lane.b32.xlu2 %v300_v35, %s2724_s7 }
 0x1a5   :  { %405 = vrot.lane.b32.xlu1 %v204_v34, %s2717_s0 }
 0x1a6   :  { %v336_v37 = vpop.permute.xlu2 %335 }
 0x1a7   :  { %v526_v36 = vpop.permute.xlu1 %525  ;;  %v826_v3 = vsel %vm63_vm0, %v2945_v42, %v336_v37 }
 0x1a8   :  { %v875_v49 = vsel %vm870_vm5, %v858_v44, %v526_v36 }
 0x1a9   :  { %v892_v15 = vsel %vm887_vm6, %v875_v49, %v590_v26 }
 0x1ac   :  { %349 = vrot.lane.b32.xlu2 %v3175_v41, %s2721_s29 }
 0x1ad   :  { %413 = vrot.lane.b32.xlu1 %v3134_v2, %s2717_s0 }
 0x1ae   :  { %v464_v48 = vpop.permute.xlu2 %463 }
 0x1af   :  { %v654_v45 = vpop.permute.xlu1 %653 }
 0x1b0   :  { %v909_v30 = vsel %vm4264_vm7, %v892_v15, %v654_v45 }
 0x1b1   :  { %v926_v56 = vsel %vm921_vm8, %v909_v30, %v718_v12  ;;  %v3231_v12 = vld [vmem:[#allocation2 + $0x110] sm:$0xff] }
 0x1b4   :  { %533 = vrot.lane.b32.xlu2 %v236_v52, %s2718_s26 }
 0x1b5   :  { %597 = vrot.lane.b32.xlu1 %v252_v50, %s2720_s28 }
 0x1b6   :  { %v592_v54 = vpop.permute.xlu2 %591 }
 0x1b7   :  { %v782_v53 = vpop.permute.xlu1 %781 }
 0x1b8   :  { %v943_v57 = vsel %vm938_vm10, %v926_v56, %v782_v53 }
 0x1b9   :  { %2604 = vmatmul.msk.f32.gmra.mxu0 %vm960_vm9, %v943_v57 }
 0x1bc   :  { %541 = vrot.lane.b32.xlu2 %v2999_v55, %s2718_s26 }
 0x1bd   :  { %605 = vrot.lane.b32.xlu1 %v3190_v58, %s2720_s28 }
 0x1be   :  { %v720_v62 = vpop.permute.xlu2 %719 }
 0x1bf   :  { %v400_v61 = vpop.permute.xlu1 %399 }
 0x1c0   :  { %v842_v4 = vsel %vm105_vm2, %v826_v3, %v400_v61 }
 0x1c1   :  { %v859_v5 = vsel %vm853_vm4, %v842_v4, %v464_v48 }
 0x1c4   :  { %725 = vrot.lane.b32.xlu2 %v3013_v60, %s2723_s6 }
 0x1c5   :  { %789 = vrot.lane.b32.xlu1 %v301_v63, %s2724_s7 }
 0x1c6   :  { %v338_v1 = vpop.permute.xlu2 %337 }
 0x1c7   :  { %v528_v0 = vpop.permute.xlu1 %527  ;;  %v827_v29 = vsel %vm63_vm0, %v3010_v59, %v338_v1 }
 0x1c8   :  { %v876_v10 = vsel %vm870_vm5, %v859_v5, %v528_v0 }
 0x1c9   :  { %v893_v11 = vsel %vm887_vm6, %v876_v10, %v592_v54 }
 0x1cc   :  { %343 = vrot.lane.b32.xlu2 %v236_v52, %s2721_s29 }
 0x1cd   :  { %407 = vrot.lane.b32.xlu1 %v252_v50, %s2717_s0 }
 0x1ce   :  { %v466_v8 = vpop.permute.xlu2 %465 }
 0x1cf   :  { %v656_v7 = vpop.permute.xlu1 %655 }
 0x1d0   :  { %v910_v60 = vsel %vm4264_vm7, %v893_v11, %v656_v7  ;;  %v276_v7 = vld [vmem:[#allocation2 + $0x130] sm:$0xff] }
 0x1d1   :  { %v927_v18 = vsel %vm921_vm8, %v910_v60, %v720_v62  ;;  %675 = vrot.lane.b32.xlu0 %v276_v7, %s2722_s30  ;;  %v308_v60 = vld [vmem:[#allocation2 + $0x132] sm:$0xff] }
 0x1d4   :  { %797 = vrot.lane.b32.xlu2 %v3081_v27, %s2724_s7 }
 0x1d5   :  { %471 = vrot.lane.b32.xlu1 %v2949_v43, %s2719_s27 }
 0x1d6   :  { %v594_v14 = vpop.permute.xlu2 %593 }
 0x1d7   :  { %v784_v42 = vpop.permute.xlu1 %783 }
 0x1d8   :  { %v944_v20 = vsel %vm938_vm10, %v927_v18, %v784_v42  ;;  %v307_v42 = vld [vmem:[#allocation2 + $0x122] sm:$0xff] }
 0x1d9   :  { %2605 = vmatmul.msk.f32.gmra.mxu0 %vm960_vm9, %v944_v20  ;;  %803 = vrot.lane.b32.xlu0 %v308_v60, %s2724_s7  ;;  %v172_v18 = vld [vmem:[#allocation2 + $0xa0] sm:$0xff] }
 0x1dc   :  { %415 = vrot.lane.b32.xlu2 %v3190_v58, %s2717_s0 }
 0x1dd   :  { %479 = vrot.lane.b32.xlu1 %v2976_v46, %s2719_s27 }
 0x1de   :  { %v722_v23 = vpop.permute.xlu2 %721 }
 0x1df   :  { %v402_v21 = vpop.permute.xlu1 %401 }
 0x1e0   :  { %v843_v32 = vsel %vm105_vm2, %v827_v29, %v402_v21  ;;  %v829_v21 = vsel %vm63_vm0, %v172_v18, %v3219_v24 }
 0x1e1   :  { %v860_v34 = vsel %vm853_vm4, %v843_v32, %v466_v8 }
 0x1e4   :  { %599 = vrot.lane.b32.xlu2 %v301_v63, %s2720_s28 }
 0x1e5   :  { %663 = vrot.lane.b32.xlu1 %v3221_v25, %s2722_s30 }
 0x1e6   :  { %v340_v28 = vpop.permute.xlu2 %339 }
 0x1e7   :  { %v530_v26 = vpop.permute.xlu1 %529 }
 0x1e8   :  { %v877_v37 = vsel %vm870_vm5, %v860_v34, %v530_v26 }
 0x1e9   :  { %v894_v59 = vsel %vm887_vm6, %v877_v37, %v594_v14  ;;  %v291_v14 = vld [vmem:[#allocation2 + $0x121] sm:$0xff] }
 0x1ec   :  { %607 = vrot.lane.b32.xlu2 %v3081_v27, %s2720_s28  ;;  %v478_v27 = vpop.permute.xlu0 %477 }
 0x1ed   :  { %671 = vrot.lane.b32.xlu1 %v3231_v12, %s2722_s30 }
 0x1ee   :  { %v468_v36 = vpop.permute.xlu2 %467 }
 0x1ef   :  { %v658_v35 = vpop.permute.xlu1 %657 }
 0x1f0   :  { %v911_v38 = vsel %vm4264_vm7, %v894_v59, %v658_v35 }
 0x1f1   :  { %v928_v48 = vsel %vm921_vm8, %v911_v38, %v722_v23 }
 0x1f4   :  { %791 = vrot.lane.b32.xlu2 %v3108_v47, %s2724_s7  ;;  %v662_v50 = vpop.permute.xlu0 %661  ;;  %v828_v47 = vsel %vm63_vm0, %v3063_v16, %v340_v28 }
 0x1f5   :  { %735 = vrot.lane.b32.xlu1 %v290_v40, %s2723_s6 }
 0x1f6   :  { %v596_v45 = vpop.permute.xlu2 %595 }
 0x1f7   :  { %v786_v44 = vpop.permute.xlu1 %785 }
 0x1f8   :  { %v945_v49 = vsel %vm938_vm10, %v928_v48, %v786_v44 }
 0x1f9   :  { %2606 = vmatmul.msk.f32.gmra.mxu0 %vm960_vm9, %v945_v49 }
 0x1fc   :  { %409 = vrot.lane.b32.xlu2 %v301_v63, %s2717_s0  ;;  %v670_v57 = vpop.permute.xlu0 %669 }
 0x1fd   :  { %353 = vrot.lane.b32.xlu1 %v2988_v51, %s2721_s29 }
 0x1fe   :  { %v788_v30 = vpop.permute.xlu2 %787 }
 0x1ff   :  { %v404_v15 = vpop.permute.xlu1 %403 }
 0x200   :  { %v844_v52 = vsel %vm105_vm2, %v828_v47, %v404_v15 }
 0x201   :  { %v861_v56 = vsel %vm853_vm4, %v844_v52, %v468_v36 }
 0x204   :  { %473 = vrot.lane.b32.xlu2 %v3221_v25, %s2719_s27  ;;  %v734_v3 = vpop.permute.xlu0 %733 }
 0x205   :  { %537 = vrot.lane.b32.xlu1 %v3051_v9, %s2718_s26 }
 0x206   :  { %v350_v54 = vpop.permute.xlu2 %349 }
 0x207   :  { %v532_v53 = vpop.permute.xlu1 %531 }
 0x208   :  { %v878_v51 = vsel %vm870_vm5, %v861_v56, %v532_v53 }
 0x209   :  { %v895_v61 = vsel %vm887_vm6, %v878_v51, %v596_v45 }
 0x20a   :  { %v912_v62 = vsel %vm4264_vm7, %v895_v61, %v660_v19 }
 0x20c   :  { %481 = vrot.lane.b32.xlu2 %v3231_v12, %s2719_s27  ;;  %v3276_v8 = vpop.permute.xlu0 %351 }
 0x20d   :  { %545 = vrot.lane.b32.xlu1 %v290_v40, %s2718_s26 }
 0x20e   :  { %v534_v63 = vpop.permute.xlu2 %533 }
 0x20f   :  { %v724_v16 = vpop.permute.xlu1 %723 }
 0x210   :  { %v929_v0 = vsel %vm921_vm8, %v912_v62, %v724_v16 }
 0x211   :  { %v946_v1 = vsel %vm938_vm10, %v929_v0, %v788_v30 }
 0x212   :  { %2607 = vmatmul.msk.f32.gmra.mxu0 %vm960_vm9, %v946_v1  ;;  %v834_v1 = vsel %vm63_vm0, %v2925_v39, %v3276_v8 }
 0x214   :  { %665 = vrot.lane.b32.xlu2 %v3146_v13, %s2722_s30 }
 0x215   :  { %729 = vrot.lane.b32.xlu1 %v3175_v41, %s2723_s6 }
 0x216   :  { %v542_v5 = vpop.permute.xlu2 %541 }
 0x217   :  { %v406_v4 = vpop.permute.xlu1 %405 }
 0x218   :  { %v845_v26 = vsel %vm105_vm2, %v829_v21, %v406_v4 }
 0x219   :  { %v862_v29 = vsel %vm853_vm4, %v845_v26, %v3228_v31 }
 0x21a   :  { %v879_v24 = vsel %vm870_vm5, %v862_v29, %v534_v63 }
 0x21c   :  { %673 = vrot.lane.b32.xlu2 %v3156_v22, %s2722_s30  ;;  %v833_v22 = vsel %vm63_vm0, %v3146_v13, %v350_v54 }
 0x21d   :  { %347 = vrot.lane.b32.xlu1 %v3051_v9, %s2721_s29  ;;  %v536_v9 = vpop.permute.xlu0 %535 }
 0x21e   :  { %v726_v11 = vpop.permute.xlu2 %725 }
 0x21f   :  { %v414_v10 = vpop.permute.xlu1 %413 }
 0x220   :  { %v849_v23 = vsel %vm105_vm2, %v833_v22, %v414_v10 }
 0x221   :  { %v866_v28 = vsel %vm853_vm4, %v849_v23, %v478_v27 }
 0x222   :  { %v883_v13 = vsel %vm870_vm5, %v866_v28, %v542_v5 }
 0x224   :  { %737 = vrot.lane.b32.xlu2 %v291_v14, %s2723_s6 }
 0x225   :  { %801 = vrot.lane.b32.xlu1 %v307_v42, %s2724_s7  ;;  %v544_v59 = vpop.permute.xlu0 %543 }
 0x226   :  { %v344_v20 = vpop.permute.xlu2 %343 }
 0x227   :  { %v598_v19 = vpop.permute.xlu1 %597  ;;  %v830_v52 = vsel %vm63_vm0, %v2903_v33, %v344_v20 }
 0x228   :  { %v896_v36 = vsel %vm887_vm6, %v879_v24, %v598_v19 }
 0x22c   :  { %355 = vrot.lane.b32.xlu2 %v290_v40, %s2721_s29 }
 0x22d   :  { %419 = vrot.lane.b32.xlu1 %v3065_v17, %s2717_s0  ;;  %v913_v17 = vsel %vm4264_vm7, %v896_v36, %v662_v50  ;;  %v728_v48 = vpop.permute.xlu0 %727  ;;  %v292_v50 = vld [vmem:[#allocation2 + $0x131] sm:$0xff] }
 0x22e   :  { %v798_v34 = vpop.permute.xlu2 %797  ;;  %v930_v44 = vsel %vm921_vm8, %v913_v17, %v726_v11  ;;  %v2725_v17 = vmov 64.0  }
 0x22f   :  { %v606_v32 = vpop.permute.xlu1 %605  ;;  %2680 = vrcp.f32 %v2725_v17 }
 0x230   :  { %v900_v35 = vsel %vm887_vm6, %v883_v13, %v606_v32 }
 0x231   :  { %v917_v37 = vsel %vm4264_vm7, %v900_v35, %v670_v57 }
 0x232   :  { %v934_v31 = vsel %vm921_vm8, %v917_v37, %v734_v3 }
 0x233   :  { %v951_v38 = vsel %vm938_vm10, %v934_v31, %v798_v34 }
 0x234   :  { %2612 = vmatmul.msk.f32.vlgmr.msra.gmra.mxu3 %vm960_vm9, %v951_v38  ;;  %539 = vrot.lane.b32.xlu2 %v3175_v41, %s2718_s26 }
 0x235   :  { %603 = vrot.lane.b32.xlu1 %v3134_v2, %s2720_s28  ;;  %v346_v2 = vpop.permute.xlu0 %345 }
 0x236   :  { %v416_v27 = vpop.permute.xlu2 %415  ;;  %v831_v13 = vsel %vm63_vm0, %v2949_v43, %v346_v2 }
 0x237   :  { %v790_v40 = vpop.permute.xlu1 %789  ;;  %v850_v4 = vsel %vm105_vm2, %v834_v1, %v416_v27 }
 0x238   :  { %v947_v45 = vsel %vm938_vm10, %v930_v44, %v790_v40 }
 0x239   :  { %2608 = vmatmul.msk.f32.gmra.mxu0 %vm960_vm9, %v947_v45 }
 0x23c   :  { %547 = vrot.lane.b32.xlu2 %v291_v14, %s2718_s26 }
 0x23d   :  { %611 = vrot.lane.b32.xlu1 %v307_v42, %s2720_s28  ;;  %v800_v47 = vpop.permute.xlu0 %799 }
 0x23e   :  { %v600_v15 = vpop.permute.xlu2 %599 }
 0x23f   :  { %v408_v49 = vpop.permute.xlu1 %407 }
 0x240   :  { %v846_v56 = vsel %vm105_vm2, %v830_v52, %v408_v49 }
 0x244   :  { %731 = vrot.lane.b32.xlu2 %v2999_v55, %s2723_s6 }
 0x245   :  { %795 = vrot.lane.b32.xlu1 %v3190_v58, %s2724_s7  ;;  %v3320_v58 = vpop.f32.mrf.mxu0  ;;  %v3324_v62 = vpop.permute.xlu0 %417 }
 0x246   :  { %v608_v30 = vpop.permute.xlu2 %607  ;;  %v1078_v40 = vsel %vm105_vm2, %v3320_v58, 0.0 }
 0x247   :  { %v472_v41 = vpop.permute.xlu1 %471 }
 0x248   :  { %v863_v51 = vsel %vm853_vm4, %v846_v56, %v472_v41 }
 0x249   :  { %v880_v55 = vsel %vm870_vm5, %v863_v51, %v536_v9 }
 0x24a   :  { %v897_v16 = vsel %vm887_vm6, %v880_v55, %v600_v15 }
 0x24c   :  { %739 = vrot.lane.b32.xlu2 %v292_v50, %s2723_s6 }
 0x24d   :  { %v3333_v3 = vpop.f32.mrf.mxu0  ;;  %v602_v11 = vpop.permute.xlu0 %601 }
 0x24e   :  { %v792_v53 = vpop.permute.xlu2 %791  ;;  %v1079_v31 = vsel %vm105_vm2, %v3333_v3, 0.0 }
 0x24f   :  { %v480_v54 = vpop.permute.xlu1 %479  ;;  %v1080_v44 = vadd.f32 %v1079_v31, %v1078_v40 }
 0x250   :  { %v867_v10 = vsel %vm853_vm4, %v850_v4, %v480_v54 }
 0x251   :  { %v884_v60 = vsel %vm870_vm5, %v867_v10, %v544_v59 }
 0x252   :  { %v901_v42 = vsel %vm887_vm6, %v884_v60, %v608_v30 }
 0x255   :  { %v3342_v20 = vpop.f32.mrf.mxu0  ;;  %v3347_v9 = vpop.permute.xlu0 %609 }
 0x256   :  { %v410_v57 = vpop.permute.xlu2 %409  ;;  %v1081_v27 = vsel %vm105_vm2, %v3342_v20, 0.0 }
 0x257   :  { %v664_v61 = vpop.permute.xlu1 %663  ;;  %v847_v34 = vsel %vm105_vm2, %v831_v13, %v410_v57  ;;  %v1082_v2 = vadd.f32 %v1081_v27, %v1080_v44 }
 0x258   :  { %v914_v63 = vsel %vm4264_vm7, %v897_v16, %v664_v61 }
 0x259   :  { %v931_v33 = vsel %vm921_vm8, %v914_v63, %v728_v48 }
 0x25a   :  { %v948_v0 = vsel %vm938_vm10, %v931_v33, %v792_v53  ;;  %v2681_v53 = vpop.eup %2680 }
 0x25b   :  { %2609 = vmatmul.msk.f32.gmra.mxu0 %vm960_vm9, %v948_v0  ;;  %v1121_v61 = vmul.f32 64.0, %v2681_v53  ;;  %vm1125_vm12 = vweird.f32 %v2681_v53 }
 0x25d   :  { %v3349_v23 = vpop.f32.mrf.mxu0  ;;  %v794_v26 = vpop.permute.xlu0 %793 }
 0x25e   :  { %v474_v5 = vpop.permute.xlu2 %473  ;;  %v1083_v45 = vsel %vm105_vm2, %v3349_v23, 0.0 }
 0x25f   :  { %v672_v7 = vpop.permute.xlu1 %671  ;;  %v864_v59 = vsel %vm853_vm4, %v847_v34, %v474_v5  ;;  %v1122_v5 = vsub.f32 1.0, %v1121_v61 }
 0x260   :  { %v918_v14 = vsel %vm4264_vm7, %v901_v42, %v672_v7 }
 0x265   :  { %v3361_v32 = vpop.f32.mrf.mxu0  ;;  %v3382_v36 = vpop.permute.xlu0 %411 }
 0x266   :  { %v3340_v19 = vpop.permute.xlu2 %481  ;;  %v1085_v50 = vsel %vm105_vm2, %v3361_v32, 0.0 }
 0x267   :  { %v736_v18 = vpop.permute.xlu1 %735 }
 0x268   :  { %v935_v39 = vsel %vm921_vm8, %v918_v14, %v736_v18  ;;  %v1123_v14 = vmul.f32 %v2681_v53, %v1122_v5 }
 0x269   :  { %v952_v8 = vsel %vm938_vm10, %v935_v39, %v800_v47 }
 0x26a   :  { %2613 = vmatmul.msk.f32.gmra.mxu3 %vm960_vm9, %v952_v8 }
 0x26d   :  { %v3384_v37 = vpop.f32.mrf.mxu0  ;;  %v3422_v54 = vpop.permute.xlu0 %475 }
 0x26e   :  { %v666_v21 = vpop.permute.xlu2 %665  ;;  %v1087_v6 = vsel %vm105_vm2, %v3384_v37, 0.0 }
 0x26f   :  { %v354_v22 = vpop.permute.xlu1 %353 }
 0x270   :  { %v835_v48 = vsel %vm63_vm0, %v2976_v46, %v354_v22  ;;  %v1084_v46 = vadd.f32 %v1083_v45, %v1082_v2 }
 0x271   :  { %v851_v56 = vsel %vm105_vm2, %v835_v48, %v3324_v62 }
 0x272   :  { %v1086_v51 = vadd.f32 %v1085_v50, %v1084_v46  ;;  %v868_v57 = vsel %vm853_vm4, %v851_v56, %v3340_v19 }
 0x274   :  { %v1088_v16 = vadd.f32 %v1087_v6, %v1086_v51 }
 0x276   :  { %v3357_v29 = vpop.permute.xlu2 %673  ;;  %v3416_v41 = vpop.f32.mrf.mxu0 }
 0x277   :  { %v538_v28 = vpop.permute.xlu1 %537  ;;  %v1089_v55 = vsel %vm105_vm2, %v3416_v41, 0.0 }
 0x278   :  { %v881_v43 = vsel %vm870_vm5, %v864_v59, %v538_v28  ;;  %v1090_v0 = vadd.f32 %v1089_v55, %v1088_v16 }
 0x279   :  { %v898_v38 = vsel %vm887_vm6, %v881_v43, %v602_v11  ;;  %v484_v11 = vpop.permute.xlu0 %483 }
 0x27a   :  { %v915_v15 = vsel %vm4264_vm7, %v898_v38, %v666_v21  ;;  %v1124_v21 = vadd.f32 %v2681_v53, %v1123_v14 }
 0x27c   :  { %v3442_v28 = vsel %vm1125_vm12, %v2681_v53, %v1124_v21  ;;  %vm2029_vm12 = vcmask 326656  }
 0x27e   :  { %v738_v35 = vpop.permute.xlu2 %737 }
 0x27f   :  { %v546_v24 = vpop.permute.xlu1 %545 }
 0x280   :  { %v885_v63 = vsel %vm870_vm5, %v868_v57, %v546_v24 }
 0x281   :  { %v902_v62 = vsel %vm887_vm6, %v885_v63, %v3347_v9  ;;  %v668_v34 = vpop.permute.xlu0 %667 }
 0x282   :  { %v919_v60 = vsel %vm4264_vm7, %v902_v62, %v3357_v29 }
 0x283   :  { %v936_v19 = vsel %vm921_vm8, %v919_v60, %v738_v35 }
 0x286   :  { %v356_v47 = vpop.permute.xlu2 %355 }
 0x287   :  { %v730_v49 = vpop.permute.xlu1 %729  ;;  %v836_v2 = vsel %vm63_vm0, %v3231_v12, %v356_v47 }
 0x288   :  { %v932_v30 = vsel %vm921_vm8, %v915_v15, %v730_v49 }
 0x289   :  { %v949_v52 = vsel %vm938_vm10, %v932_v30, %v794_v26  ;;  %v676_v44 = vpop.permute.xlu0 %675 }
 0x28a   :  { %2610 = vmatmul.msk.f32.gmra.mxu0 %vm960_vm9, %v949_v52 }
 0x28e   :  { %v540_v10 = vpop.permute.xlu2 %539 }
 0x28f   :  { %v348_v33 = vpop.permute.xlu1 %347  ;;  %v1051_v1 = vpop.f32.mrf.mxu0 }
 0x290   :  { %v1091_v4 = vsel %vm105_vm2, %v1051_v1, 0.0  ;;  %v832_v45 = vsel %vm63_vm0, %v3221_v25, %v348_v33 }
 0x291   :  { %v1092_v7 = vadd.f32 %v1091_v4, %v1090_v0  ;;  %v848_v25 = vsel %vm105_vm2, %v832_v45, %v3382_v36  ;;  %v804_v5 = vpop.permute.xlu0 %803 }
 0x292   :  { %v865_v55 = vsel %vm853_vm4, %v848_v25, %v3422_v54 }
 0x293   :  { %v1093_v42 = vrot.slane %v1092_v7, 4 }
 0x295   :  { %v1094_v18 = vadd.f32 %v1093_v42, %v1092_v7 }
 0x296   :  { %v548_v13 = vpop.permute.xlu2 %547 }
 0x297   :  { %v802_v39 = vpop.permute.xlu1 %801  ;;  %v1095_v8 = vrot.slane %v1094_v18, 2 }
 0x298   :  { %v953_v22 = vsel %vm938_vm10, %v936_v19, %v802_v39 }
 0x299   :  { %2614 = vmatmul.msk.f32.gmra.mxu3 %vm960_vm9, %v953_v22  ;;  %v1096_v9 = vadd.f32 %v1095_v8, %v1094_v18 }
 0x29b   :  { %v1097_v26 = vrot.slane %v1096_v9, 1 }
 0x29d   :  { %v1098_v29 = vadd.f32 %v1097_v26, %v1096_v9 }
 0x29e   :  { %v732_v49 = vpop.permute.xlu2 %731 }
 0x29f   :  { %v420_v24 = vpop.permute.xlu1 %419  ;;  %v1127_v59 = vmul.f32 %v3442_v28, %v1098_v29 }
 0x2a0   :  { %v852_v53 = vsel %vm105_vm2, %v836_v2, %v420_v24 }
 0x2a1   :  { %v3446_v35 = vsub.f32 %v3320_v58, %v1127_v59  ;;  %v3449_v43 = vsub.f32 %v3333_v3, %v1127_v59  ;;  %v3452_v31 = vsub.f32 %v3342_v20, %v1127_v59  ;;  %v3455_v38 = vsub.f32 %v3349_v23, %v1127_v59 }
 0x2a2   :  { %v3458_v17 = vsub.f32 %v3361_v32, %v1127_v59  ;;  %v3467_v3 = vsub.f32 %v3384_v37, %v1127_v59  ;;  %v3478_v37 = vsub.f32 %v3416_v41, %v1127_v59  ;;  %v1136_v46 = vsub.f32 %v1051_v1, %v1127_v59 }
 0x2a3   :  { %v1145_v40 = vmul.f32 %v3446_v35, %v3446_v35  ;;  %v1146_v27 = vmul.f32 %v3449_v43, %v3449_v43  ;;  %v1147_v58 = vmul.f32 %v3452_v31, %v3452_v31  ;;  %v1148_v20 = vmul.f32 %v3455_v38, %v3455_v38 }
 0x2a4   :  { %v1149_v30 = vmul.f32 %v3458_v17, %v3458_v17  ;;  %v1150_v56 = vmul.f32 %v3467_v3, %v3467_v3  ;;  %v1151_v41 = vmul.f32 %v3478_v37, %v3478_v37  ;;  %v869_v51 = vsel %vm853_vm4, %v852_v53, %v484_v11 }
 0x2a5   :  { %v1161_v23 = vsel %vm105_vm2, %v1145_v40, 0.0  ;;  %v1162_v32 = vsel %vm105_vm2, %v1146_v27, 0.0  ;;  %v1164_v50 = vsel %vm105_vm2, %v1147_v58, 0.0  ;;  %v1166_v12 = vsel %vm105_vm2, %v1148_v20, 0.0  ;;  %v1324_v40 = vld [vmem:[#allocation3 + $0x1] sm:$0xff] }
 0x2a6   :  { %v1163_v48 = vadd.f32 %v1162_v32, %v1161_v23  ;;  %v1168_v6 = vsel %vm105_vm2, %v1149_v30, 0.0  ;;  %v1152_v61 = vmul.f32 %v1136_v46, %v1136_v46  ;;  %v1170_v36 = vsel %vm105_vm2, %v1150_v56, 0.0  ;;  %v740_v0 = vpop.permute.xlu2 %739  ;;  %1469 = vrot.lane.b32.xlu1 %v1324_v40, %s2717_s0 }
 0x2a7   :  { %v604_v15 = vpop.permute.xlu1 %603  ;;  %v886_v33 = vsel %vm870_vm5, %v869_v51, %v548_v13  ;;  %v882_v1 = vsel %vm870_vm5, %v865_v55, %v540_v10  ;;  %v1172_v62 = vsel %vm105_vm2, %v1151_v41, 0.0 }
 0x2a8   :  { %v1165_v52 = vadd.f32 %v1164_v50, %v1163_v48  ;;  %v899_v11 = vsel %vm887_vm6, %v882_v1, %v604_v15  ;;  %v1174_v60 = vsel %vm105_vm2, %v1152_v61, 0.0 }
 0x2a9   :  { %v916_v19 = vsel %vm4264_vm7, %v899_v11, %v668_v34  ;;  %v1340_v34 = vld [vmem:[#allocation3 + $0x2] sm:$0xff] }
 0x2aa   :  { %v1167_v47 = vadd.f32 %v1166_v12, %v1165_v52  ;;  %v933_v22 = vsel %vm921_vm8, %v916_v19, %v732_v49  ;;  %1533 = vrot.lane.b32.xlu2 %v1340_v34, %s2718_s26  ;;  %v2105_v34 = vld [vmem:[%s4260_s2 + $0x40] sm:$0xff] }
 0x2ab   :  { %2162 = vmatpush.msra.mxu1 %v2105_v34  ;;  %2653 = vmatpush.msrb.mxu3 %v2105_v34 }
 0x2ac   :  { %v1169_v57 = vadd.f32 %v1168_v6, %v1167_v47 }
 0x2ae   :  { %v1171_v16 = vadd.f32 %v1170_v36, %v1169_v57 }
 0x2af   :  { %v612_v63 = vpop.permute.xlu1 %611 }
 0x2b0   :  { %v903_v4 = vsel %vm887_vm6, %v886_v33, %v612_v63  ;;  %v1173_v7 = vadd.f32 %v1172_v62, %v1171_v16 }
 0x2b1   :  { %v920_v54 = vsel %vm4264_vm7, %v903_v4, %v676_v44 }
 0x2b2   :  { %v937_v42 = vsel %vm921_vm8, %v920_v54, %v740_v0  ;;  %v1175_v14 = vadd.f32 %v1174_v60, %v1173_v7 }
 0x2b3   :  { %v954_v18 = vsel %vm938_vm10, %v937_v42, %v804_v5 }
 0x2b4   :  { %2615 = vmatmul.msk.f32.gmra.mxu3 %vm960_vm9, %v954_v18  ;;  %v1176_v10 = vrot.slane %v1175_v14, 4 }
 0x2b6   :  { %v1177_v39 = vadd.f32 %v1176_v10, %v1175_v14  ;;  %v3564_v7 = vpop.f32.mrf.mxu0 }
 0x2b7   :  { %v796_v8 = vpop.permute.xlu1 %795  ;;  %v3569_v54 = vpop.f32.mrf.mxu3 }
 0x2b8   :  { %v950_v21 = vsel %vm938_vm10, %v933_v22, %v796_v8  ;;  %v1178_v9 = vrot.slane %v1177_v39, 2  ;;  %v1099_v8 = vsel %vm105_vm2, %v3564_v7, 0.0  ;;  %v1106_v40 = vsel %vm105_vm2, %v3569_v54, 0.0 }
 0x2b9   :  { %2611 = vmatmul.msk.f32.gmra.mxu0 %vm960_vm9, %v950_v21 }
 0x2ba   :  { %v1179_v26 = vadd.f32 %v1178_v9, %v1177_v39 }
 0x2bc   :  { %v1180_v13 = vrot.slane %v1179_v26, 1 }
 0x2be   :  { %v1181_v29 = vadd.f32 %v1180_v13, %v1179_v26 }
 0x2c0   :  { %v1203_v24 = vmul.f32 %v1181_v29, %v3442_v28 }
 0x2c2   :  { %v1205_v59 = vadd.f32 1e-05, %v1203_v24 }
 0x2c4   :  { %2682 = vrsqrt.f32 %v1205_v59  ;;  %vm1213_vm14 = vweird.f32 %v1205_v59 }
 0x2ca   :  { %v2683_v27 = vpop.eup %2682 }
 0x2cb   :  { %v1208_v58 = vmul.f32 %v2683_v27, %v1205_v59  ;;  %vm1214_vm13 = vweird.f32 %v2683_v27 }
 0x2cc   :  { %vm1215_vm15 = vmor %vm1213_vm14, %vm1214_vm13  ;;  %vm2046_vm13 = vcmask 392192   ;;  %vm2063_vm14 = vcmask 457728  }
 0x2cd   :  { %v1209_v20 = vmul.f32 %v2683_v27, %v1208_v58 }
 0x2cf   :  { %v1210_v23 = vmul.f32 0.5, %v1209_v20  ;;  %v2104_v20 = vld [vmem:[%s4260_s2 + $0x38] sm:$0xff] }
 0x2d0   :  { %2163 = vmatpush.msra.mxu1 %v2104_v20  ;;  %2654 = vmatpush.msrb.mxu3 %v2104_v20 }
 0x2d1   :  { %v1211_v32 = vsub.f32 1.5, %v1210_v23 }
 0x2d3   :  { %v1212_v44 = vmul.f32 %v2683_v27, %v1211_v32 }
 0x2d5   :  { %v1216_v45 = vsel %vm1215_vm15, %v2683_v27, %v1212_v44  ;;  %vm2080_vm15 = vcmask 523264  }
 0x2d6   :  { %v1227_v48 = vmul.f32 %v1216_v45, %v3446_v35  ;;  %v1228_v49 = vmul.f32 %v1216_v45, %v3449_v43  ;;  %v1229_v15 = vmul.f32 %v1216_v45, %v3452_v31  ;;  %v1230_v2 = vmul.f32 %v1216_v45, %v3455_v38 }
 0x2d7   :  { %v1231_v30 = vmul.f32 %v1216_v45, %v3458_v17  ;;  %v1232_v50 = vmul.f32 %v1216_v45, %v3467_v3  ;;  %v1233_v52 = vmul.f32 %v1216_v45, %v3478_v37  ;;  %v1234_v53 = vmul.f32 %v1216_v45, %v1136_v46 }
 0x2d8   :  { %vm1243_vm0 = vcmp.ge.f32.partialorder %v1227_v48, 0.0  ;;  %vm1244_vm1 = vcmp.ge.f32.partialorder %v1228_v49, 0.0  ;;  %vm1245_vm3 = vcmp.ge.f32.partialorder %v1229_v15, 0.0  ;;  %vm1246_vm4 = vcmp.ge.f32.partialorder %v1230_v2, 0.0  ;;  %v3571_v60 = vpop.f32.mrf.mxu0 }
 0x2d9   :  { %vm1247_vm6 = vcmp.ge.f32.partialorder %v1231_v30, 0.0  ;;  %v1259_v25 = vmul.f32 0.01, %v1227_v48  ;;  %v1260_v35 = vmul.f32 0.01, %v1228_v49  ;;  %vm1248_vm8 = vcmp.ge.f32.partialorder %v1232_v50, 0.0 }
 0x2da   :  { %v1261_v56 = vmul.f32 0.01, %v1229_v15  ;;  %v1262_v43 = vmul.f32 0.01, %v1230_v2  ;;  %v1263_v12 = vmul.f32 0.01, %v1231_v30 }
 0x2db   :  { %v1264_v31 = vmul.f32 0.01, %v1232_v50  ;;  %v1265_v38 = vmul.f32 0.01, %v1233_v52  ;;  %v1275_v47 = vsel %vm1243_vm0, %v1227_v48, %v1259_v25  ;;  %v1276_v17 = vsel %vm1244_vm1, %v1228_v49, %v1260_v35  ;;  %v2103_v48 = vld [vmem:[%s4260_s2 + $0x30] sm:$0xff]  ;;  %v2100_v25 = vld [vmem:[%s4260_s2 + $0x18] sm:$0xff] }
 0x2dc   :  { %vm1249_vm9 = vcmp.ge.f32.partialorder %v1233_v52, 0.0  ;;  %v1266_v3 = vmul.f32 0.01, %v1234_v53  ;;  %v1277_v41 = vsel %vm1245_vm3, %v1229_v15, %v1261_v56  ;;  %v1278_v37 = vsel %vm1246_vm4, %v1230_v2, %v1262_v43  ;;  %1292 = vst.msk [vmem:[#allocation3 + $0x11] sm:$0xff] %vm105_vm2, %v1275_v47  ;;  %2164 = vmatpush.msra.mxu1 %v2103_v48  ;;  %v2102_v2 = vld [vmem:[%s4260_s2 + $0x28] sm:$0xff]  ;;  %2655 = vmatpush.msrb.mxu3 %v2103_v48  ;;  %v2099_v43 = vld [vmem:[%s4260_s2 + $0x10] sm:$0xff] }
 0x2dd   :  { %vm1250_vm11 = vcmp.ge.f32.partialorder %v1234_v53, 0.0  ;;  %v1279_v46 = vsel %vm1247_vm6, %v1231_v30, %v1263_v12  ;;  %1293 = vst.msk [vmem:[#allocation3 + $0x21] sm:$0xff] %vm105_vm2, %v1276_v17  ;;  %v1280_v6 = vsel %vm1248_vm8, %v1232_v50, %v1264_v31  ;;  %v1281_v51 = vsel %vm1249_vm9, %v1233_v52, %v1265_v38  ;;  %v2101_v52 = vld [vmem:[%s4260_s2 + $0x20] sm:$0xff]  ;;  %v2098_v38 = vld [vmem:[%s4260_s2 + $0x8] sm:$0xff] }
 0x2de   :  { %1294 = vst.msk [vmem:[#allocation3 + $0x31] sm:$0xff] %vm105_vm2, %v1277_v41  ;;  %v1282_v55 = vsel %vm1250_vm11, %v1234_v53, %v1266_v3  ;;  %v1100_v39 = vsel %vm105_vm2, %v3571_v60, 0.0  ;;  %2165 = vmatpush.msra.mxu1 %v2102_v2  ;;  %2656 = vmatpush.msrb.mxu3 %v2102_v2  ;;  %v2097_v3 = vld [vmem:[%s4260_s2] sm:$0xff]  ;;  %vm2106_vm0 = vcmask 588800  }
 0x2df   :  { %1295 = vst.msk [vmem:[#allocation3 + $0x41] sm:$0xff] %vm105_vm2, %v1278_v37  ;;  %v1101_v21 = vadd.f32 %v1100_v39, %v1099_v8 }
 0x2e0   :  { %1296 = vst.msk [vmem:[#allocation3 + $0x51] sm:$0xff] %vm105_vm2, %v1279_v46  ;;  %2166 = vmatpush.msra.mxu1 %v2101_v52  ;;  %2657 = vmatpush.msrb.mxu3 %v2101_v52 }
 0x2e1   :  { %1297 = vst.msk [vmem:[#allocation3 + $0x61] sm:$0xff] %vm105_vm2, %v1280_v6 }
 0x2e2   :  { %1298 = vst.msk [vmem:[#allocation3 + $0x71] sm:$0xff] %vm105_vm2, %v1281_v51  ;;  %2167 = vmatpush.msra.mxu1 %v2100_v25  ;;  %2658 = vmatpush.msrb.mxu3 %v2100_v25 }
 0x2e3   :  { %1299 = vst.msk [vmem:[#allocation3 + $0x81] sm:$0xff] %vm105_vm2, %v1282_v55  ;;  %v1388_v57 = vld [vmem:[#allocation3 + $0x12] sm:$0xff] }
 0x2e4   :  { %v1372_v61 = vld [vmem:[#allocation3 + $0x11] sm:$0xff]  ;;  %1725 = vrot.lane.b32.xlu2 %v1388_v57, %s2726_s1  ;;  %v1437_v16 = vld [vmem:[#allocation3 + $0x22] sm:$0xff]  ;;  %2168 = vmatpush.msra.mxu1 %v2099_v43 }
 0x2e5   :  { %v3529_v36 = vld [vmem:[#allocation3 + $0x10] sm:$0xff]  ;;  %1661 = vrot.lane.b32.xlu1 %v1372_v61, %s2724_s7  ;;  %v1421_v63 = vld [vmem:[#allocation3 + $0x21] sm:$0xff]  ;;  %2659 = vmatpush.msrb.mxu3 %v2099_v43 }
 0x2e6   :  { %1597 = vrot.lane.b32.xlu0 %v3529_v36, %s2722_s30  ;;  %v3537_v33 = vld [vmem:[#allocation3 + $0x20] sm:$0xff]  ;;  %v3545_v0 = vld [vmem:[#allocation3 + $0x30] sm:$0xff]  ;;  %2169 = vmatpush.msra.mxu1 %v2098_v38 }
 0x2e7   :  { %v1438_v1 = vld [vmem:[#allocation3 + $0x32] sm:$0xff]  ;;  %v1423_v4 = vld [vmem:[#allocation3 + $0x41] sm:$0xff]  ;;  %2660 = vmatpush.msrb.mxu3 %v2098_v38 }
 0x2e8   :  { %v1422_v62 = vld [vmem:[#allocation3 + $0x31] sm:$0xff]  ;;  %v3558_v5 = vld [vmem:[#allocation3 + $0x40] sm:$0xff]  ;;  %2170 = vmatpush.msra.mxu1 %v2097_v3 }
 0x2e9   :  { %v1439_v11 = vld [vmem:[#allocation3 + $0x42] sm:$0xff]  ;;  %v3579_v14 = vld [vmem:[#allocation3 + $0x52] sm:$0xff]  ;;  %2661 = vmatpush.msrb.mxu3 %v2097_v3 }
 0x2ea   :  { %v1424_v18 = vld [vmem:[#allocation3 + $0x51] sm:$0xff]  ;;  %v3622_v45 = vld [vmem:[#allocation3 + $0x60] sm:$0xff] }
 0x2eb   :  { %v3586_v10 = vld [vmem:[#allocation3 + $0x50] sm:$0xff]  ;;  %v3645_v56 = vld [vmem:[#allocation3 + $0x62] sm:$0xff] }
 0x2ec   :  { %1917 = vrot.lane.b32.xlu2 %v1437_v16, %s2727_s18  ;;  %v3653_v31 = vld [vmem:[#allocation3 + $0x61] sm:$0xff]  ;;  %v3703_v39 = vld [vmem:[#allocation3 + $0x71] sm:$0xff] }
 0x2ed   :  { %1853 = vrot.lane.b32.xlu1 %v1421_v63, %s2728_s19  ;;  %v3577_v42 = vpop.f32.mrf.mxu3  ;;  %v3705_v8 = vld [vmem:[#allocation3 + $0x70] sm:$0xff] }
 0x2ee   :  { %1789 = vrot.lane.b32.xlu0 %v3537_v33, %s2729_s20  ;;  %v1108_v58 = vsel %vm105_vm2, %v3577_v42, 0.0 }
 0x2f4   :  { %1599 = vrot.lane.b32.xlu2 %v3537_v33, %s2722_s30 }
 0x2f5   :  { %1535 = vrot.lane.b32.xlu1 %v1388_v57, %s2718_s26 }
 0x2f6   :  { %1471 = vrot.lane.b32.xlu0 %v1372_v61, %s2717_s0 }
 0x2fc   :  { %1791 = vrot.lane.b32.xlu2 %v3545_v0, %s2729_s20 }
 0x2fd   :  { %1727 = vrot.lane.b32.xlu1 %v1437_v16, %s2726_s1 }
 0x2fe   :  { %1663 = vrot.lane.b32.xlu0 %v1421_v63, %s2724_s7 }
 0x304   :  { %1473 = vrot.lane.b32.xlu2 %v1421_v63, %s2717_s0  ;;  %v3601_v13 = vpop.permute.xlu2 %1533 }
 0x305   :  { %1919 = vrot.lane.b32.xlu1 %v1438_v1, %s2727_s18 }
 0x306   :  { %1855 = vrot.lane.b32.xlu0 %v1422_v62, %s2728_s19 }
 0x307   :  { %v3581_v19 = vpop.f32.mrf.mxu0 }
 0x308   :  { %v1102_v22 = vsel %vm105_vm2, %v3581_v19, 0.0 }
 0x309   :  { %v1103_v26 = vadd.f32 %v1102_v22, %v1101_v21 }
 0x30c   :  { %1665 = vrot.lane.b32.xlu2 %v1422_v62, %s2724_s7 }
 0x30d   :  { %1601 = vrot.lane.b32.xlu1 %v3545_v0, %s2722_s30 }
 0x30e   :  { %1537 = vrot.lane.b32.xlu0 %v1437_v16, %s2718_s26 }
 0x314   :  { %1857 = vrot.lane.b32.xlu2 %v1423_v4, %s2728_s19 }
 0x315   :  { %1793 = vrot.lane.b32.xlu1 %v3558_v5, %s2729_s20 }
 0x316   :  { %1729 = vrot.lane.b32.xlu0 %v1438_v1, %s2726_s1 }
 0x318   :  { %v1470_v6 = vpop.permute.xlu1 %1469 }
 0x31c   :  { %1539 = vrot.lane.b32.xlu2 %v1438_v1, %s2718_s26  ;;  %v3596_v9 = vpop.f32.mrf.mxu3 }
 0x31d   :  { %1475 = vrot.lane.b32.xlu1 %v1422_v62, %s2717_s0  ;;  %v1110_v44 = vsel %vm105_vm2, %v3596_v9, 0.0 }
 0x31e   :  { %1921 = vrot.lane.b32.xlu0 %v1439_v11, %s2727_s18 }
 0x324   :  { %1731 = vrot.lane.b32.xlu2 %v1439_v11, %s2726_s1 }
 0x325   :  { %1667 = vrot.lane.b32.xlu1 %v1423_v4, %s2724_s7 }
 0x326   :  { %1603 = vrot.lane.b32.xlu0 %v3558_v5, %s2722_s30 }
 0x32c   :  { %1923 = vrot.lane.b32.xlu2 %v3579_v14, %s2727_s18 }
 0x32d   :  { %1859 = vrot.lane.b32.xlu1 %v1424_v18, %s2728_s19 }
 0x32e   :  { %1795 = vrot.lane.b32.xlu0 %v3586_v10, %s2729_s20 }
 0x334   :  { %1605 = vrot.lane.b32.xlu2 %v3586_v10, %s2722_s30 }
 0x335   :  { %1541 = vrot.lane.b32.xlu1 %v1439_v11, %s2718_s26 }
 0x336   :  { %v3603_v29 = vpop.f32.mrf.mxu0  ;;  %1477 = vrot.lane.b32.xlu0 %v1423_v4, %s2717_s0 }
 0x337   :  { %v1104_v24 = vsel %vm105_vm2, %v3603_v29, 0.0  ;;  %v3618_v32 = vpop.f32.mrf.mxu3 }
 0x338   :  { %v1105_v59 = vadd.f32 %v1104_v24, %v1103_v26  ;;  %v1112_v15 = vsel %vm105_vm2, %v3618_v32, 0.0 }
 0x33a   :  { %v1107_v27 = vadd.f32 %v1106_v40, %v1105_v59 }
 0x33c   :  { %v1109_v23 = vadd.f32 %v1108_v58, %v1107_v27  ;;  %1797 = vrot.lane.b32.xlu2 %v3622_v45, %s2729_s20 }
 0x33d   :  { %1733 = vrot.lane.b32.xlu1 %v3579_v14, %s2726_s1 }
 0x33e   :  { %v1111_v49 = vadd.f32 %v1110_v44, %v1109_v23  ;;  %1669 = vrot.lane.b32.xlu0 %v1424_v18, %s2724_s7  ;;  %v3637_v50 = vpop.permute.xlu2 %1725 }
 0x340   :  { %v1113_v30 = vadd.f32 %v1112_v15, %v1111_v49 }
 0x342   :  { %v1114_v53 = vrot.slane %v1113_v30, 4 }
 0x344   :  { %v1115_v35 = vadd.f32 %v1114_v53, %v1113_v30  ;;  %1479 = vrot.lane.b32.xlu2 %v1424_v18, %s2717_s0  ;;  %v1442_v30 = vld [vmem:[#allocation3 + $0x72] sm:$0xff] }
 0x345   :  { %1925 = vrot.lane.b32.xlu1 %v3645_v56, %s2727_s18 }
 0x346   :  { %v1116_v12 = vrot.slane %v1115_v35, 2  ;;  %1861 = vrot.lane.b32.xlu0 %v3653_v31, %s2728_s19  ;;  %v3660_v17 = vpop.permute.xlu2 %1917 }
 0x348   :  { %v1117_v47 = vadd.f32 %v1116_v12, %v1115_v35 }
 0x34a   :  { %v1118_v41 = vrot.slane %v1117_v47, 1 }
 0x34c   :  { %v1119_v37 = vadd.f32 %v1118_v41, %v1117_v47  ;;  %1671 = vrot.lane.b32.xlu2 %v3653_v31, %s2724_s7 }
 0x34d   :  { %1607 = vrot.lane.b32.xlu1 %v3622_v45, %s2722_s30 }
 0x34e   :  { %v1128_v46 = vmul.f32 %v3442_v28, %v1119_v37  ;;  %1543 = vrot.lane.b32.xlu0 %v3579_v14, %s2718_s26  ;;  %v3684_v16 = vpop.permute.xlu2 %1599 }
 0x350   :  { %v3673_v51 = vsub.f32 %v3564_v7, %v1128_v46  ;;  %v3676_v55 = vsub.f32 %v3571_v60, %v1128_v46  ;;  %v3679_v57 = vsub.f32 %v3581_v19, %v1128_v46  ;;  %v3682_v61 = vsub.f32 %v3603_v29, %v1128_v46  ;;  %v1308_v7 = vld [vmem:[#allocation3] sm:$0xff] }
 0x351   :  { %v3687_v63 = vsub.f32 %v3569_v54, %v1128_v46  ;;  %v3696_v11 = vsub.f32 %v3577_v42, %v1128_v46  ;;  %v1965_v19 = vsel %vm105_vm2, %v1308_v7, %v1470_v6  ;;  %v3708_v22 = vsub.f32 %v3596_v9, %v1128_v46  ;;  %v1443_v7 = vld [vmem:[#allocation3 + $0x82] sm:$0xff] }
 0x352   :  { %v1153_v1 = vmul.f32 %v3673_v51, %v3673_v51  ;;  %v1154_v62 = vmul.f32 %v3676_v55, %v3676_v55  ;;  %v1155_v4 = vmul.f32 %v3679_v57, %v3679_v57  ;;  %v1156_v60 = vmul.f32 %v3682_v61, %v3682_v61 }
 0x353   :  { %v1157_v42 = vmul.f32 %v3687_v63, %v3687_v63  ;;  %v3720_v29 = vsub.f32 %v3618_v32, %v1128_v46  ;;  %v1158_v9 = vmul.f32 %v3696_v11, %v3696_v11  ;;  %v1981_v34 = vsel %vm870_vm5, %v1965_v19, %v3601_v13 }
 0x354   :  { %v1182_v14 = vsel %vm105_vm2, %v1153_v1, 0.0  ;;  %v1183_v54 = vsel %vm105_vm2, %v1154_v62, 0.0  ;;  %v1185_v21 = vsel %vm105_vm2, %v1155_v4, 0.0  ;;  %1863 = vrot.lane.b32.xlu2 %v3703_v39, %s2728_s19  ;;  %v1187_v24 = vsel %vm105_vm2, %v1156_v60, 0.0  ;;  %v1427_v60 = vld [vmem:[#allocation3 + $0x81] sm:$0xff] }
 0x355   :  { %v1184_v18 = vadd.f32 %v1183_v54, %v1182_v14  ;;  %1799 = vrot.lane.b32.xlu1 %v3705_v8, %s2729_s20  ;;  %v1159_v20 = vmul.f32 %v3708_v22, %v3708_v22  ;;  %v1189_v23 = vsel %vm105_vm2, %v1157_v42, 0.0  ;;  %v1160_v48 = vmul.f32 %v3720_v29, %v3720_v29  ;;  %v1411_v14 = vld [vmem:[#allocation3 + $0x80] sm:$0xff] }
 0x356   :  { %1735 = vrot.lane.b32.xlu0 %v3645_v56, %s2726_s1  ;;  %v3725_v59 = vpop.permute.xlu2 %1791  ;;  %v1191_v49 = vsel %vm105_vm2, %v1158_v9, 0.0 }
 0x357   :  { %v1186_v26 = vadd.f32 %v1185_v21, %v1184_v18  ;;  %v1662_v40 = vpop.permute.xlu1 %1661  ;;  %v1193_v2 = vsel %vm105_vm2, %v1159_v20, 0.0  ;;  %v1195_v53 = vsel %vm105_vm2, %v1160_v48, 0.0 }
 0x358   :  { %v1598_v58 = vpop.permute.xlu0 %1597 }
 0x359   :  { %v1188_v27 = vadd.f32 %v1187_v24, %v1186_v26  ;;  %v1997_v44 = vsel %vm4264_vm7, %v1981_v34, %v1598_v58 }
 0x35a   :  { %v2013_v13 = vsel %vm938_vm10, %v1997_v44, %v1662_v40  ;;  %v1412_v44 = vld [vmem:[#allocation3 + $0x90] sm:$0xff] }
 0x35b   :  { %v1190_v32 = vadd.f32 %v1189_v23, %v1188_v27  ;;  %v2030_v12 = vsel %vm2029_vm12, %v2013_v13, %v3637_v50 }
 0x35c   :  { %1545 = vrot.lane.b32.xlu2 %v3645_v56, %s2718_s26 }
 0x35d   :  { %v1192_v15 = vadd.f32 %v1191_v49, %v1190_v32  ;;  %1481 = vrot.lane.b32.xlu1 %v3653_v31, %s2717_s0 }
 0x35e   :  { %1927 = vrot.lane.b32.xlu0 %v1442_v30, %s2727_s18  ;;  %v3744_v25 = vpop.permute.xlu2 %1473 }
 0x35f   :  { %v1194_v52 = vadd.f32 %v1193_v2, %v1192_v15  ;;  %v1854_v35 = vpop.permute.xlu1 %1853 }
 0x360   :  { %v1790_v56 = vpop.permute.xlu0 %1789 }
 0x361   :  { %v1196_v43 = vadd.f32 %v1195_v53, %v1194_v52  ;;  %v2047_v31 = vsel %vm2046_vm13, %v2030_v12, %v1790_v56  ;;  %v1444_v53 = vld [vmem:[#allocation3 + $0x92] sm:$0xff] }
 0x362   :  { %v2064_v47 = vsel %vm2063_vm14, %v2047_v31, %v1854_v35 }
 0x363   :  { %v1197_v38 = vrot.slane %v1196_v43, 4  ;;  %v2081_v3 = vsel %vm2080_vm15, %v2064_v47, %v3660_v17 }
 0x364   :  { %2616 = vmatmul.msk.f32.vlgmr.msra.gmra.mxu1 %vm2106_vm0, %v2081_v3  ;;  %1737 = vrot.lane.b32.xlu2 %v1442_v30, %s2726_s1 }
 0x365   :  { %v1198_v41 = vadd.f32 %v1197_v38, %v1196_v43  ;;  %1673 = vrot.lane.b32.xlu1 %v3703_v39, %s2724_s7  ;;  %v1428_v43 = vld [vmem:[#allocation3 + $0x91] sm:$0xff] }
 0x366   :  { %1609 = vrot.lane.b32.xlu0 %v3705_v8, %s2722_s30  ;;  %v3758_v37 = vpop.permute.xlu2 %1665 }
 0x367   :  { %v1199_v50 = vrot.slane %v1198_v41, 2  ;;  %v1536_v46 = vpop.permute.xlu1 %1535 }
 0x368   :  { %v1472_v1 = vpop.permute.xlu0 %1471 }
 0x369   :  { %v1200_v6 = vadd.f32 %v1199_v50, %v1198_v41  ;;  %v1966_v17 = vsel %vm105_vm2, %v3529_v36, %v1472_v1 }
 0x36a   :  { %v1982_v18 = vsel %vm870_vm5, %v1966_v17, %v1536_v46 }
 0x36b   :  { %v1201_v62 = vrot.slane %v1200_v6, 1  ;;  %v1998_v36 = vsel %vm4264_vm7, %v1982_v18, %v3684_v16 }
 0x36c   :  { %1929 = vrot.lane.b32.xlu2 %v1443_v7, %s2727_s18 }
 0x36d   :  { %v1202_v4 = vadd.f32 %v1201_v62, %v1200_v6  ;;  %1865 = vrot.lane.b32.xlu1 %v1427_v60, %s2728_s19 }
 0x36e   :  { %1801 = vrot.lane.b32.xlu0 %v1411_v14, %s2729_s20  ;;  %v3767_v19 = vpop.permute.xlu2 %1857 }
 0x36f   :  { %v1204_v54 = vmul.f32 %v1202_v4, %v3442_v28  ;;  %v1728_v42 = vpop.permute.xlu1 %1727 }
 0x370   :  { %v1664_v26 = vpop.permute.xlu0 %1663 }
 0x371   :  { %v1206_v21 = vadd.f32 1e-05, %v1204_v54  ;;  %v2014_v9 = vsel %vm938_vm10, %v1998_v36, %v1664_v26 }
 0x372   :  { %v2031_v24 = vsel %vm2029_vm12, %v2014_v9, %v1728_v42 }
 0x373   :  { %2684 = vrsqrt.f32 %v1206_v21  ;;  %v2048_v58 = vsel %vm2046_vm13, %v2031_v24, %v3725_v59  ;;  %vm1223_vm3 = vweird.f32 %v1206_v21 }
 0x374   :  { %1611 = vrot.lane.b32.xlu2 %v1411_v14, %s2722_s30 }
 0x375   :  { %1547 = vrot.lane.b32.xlu1 %v1442_v30, %s2718_s26  ;;  %v1967_v30 = vsel %vm105_vm2, %v3537_v33, %v3744_v25 }
 0x376   :  { %1483 = vrot.lane.b32.xlu0 %v3703_v39, %s2717_s0  ;;  %v3777_v40 = vpop.permute.xlu2 %1539 }
 0x377   :  { %v1920_v34 = vpop.permute.xlu1 %1919 }
 0x378   :  { %v1856_v16 = vpop.permute.xlu0 %1855 }
 0x379   :  { %v2685_v27 = vpop.eup %2684  ;;  %v2065_v23 = vsel %vm2063_vm14, %v2048_v58, %v1856_v16 }
 0x37a   :  { %v1218_v20 = vmul.f32 %v2685_v27, %v1206_v21  ;;  %v2082_v32 = vsel %vm2080_vm15, %v2065_v23, %v1920_v34  ;;  %vm1224_vm1 = vweird.f32 %v2685_v27 }
 0x37b   :  { %2617 = vmatmul.msk.f32.gmra.mxu1 %vm2106_vm0, %v2082_v32  ;;  %vm1225_vm4 = vmor %vm1223_vm3, %vm1224_vm1 }
 0x37c   :  { %v1219_v48 = vmul.f32 %v2685_v27, %v1218_v20  ;;  %1803 = vrot.lane.b32.xlu2 %v1412_v44, %s2729_s20 }
 0x37d   :  { %1739 = vrot.lane.b32.xlu1 %v1443_v7, %s2726_s1 }
 0x37e   :  { %v1220_v49 = vmul.f32 0.5, %v1219_v48  ;;  %1675 = vrot.lane.b32.xlu0 %v1427_v60, %s2724_s7  ;;  %v3787_v59 = vpop.permute.xlu2 %1731 }
 0x37f   :  { %v1602_v15 = vpop.permute.xlu1 %1601 }
 0x380   :  { %v1221_v39 = vsub.f32 1.5, %v1220_v49  ;;  %v1538_v2 = vpop.permute.xlu0 %1537 }
 0x381   :  { %v1983_v52 = vsel %vm870_vm5, %v1967_v30, %v1538_v2 }
 0x382   :  { %v1222_v13 = vmul.f32 %v2685_v27, %v1221_v39  ;;  %v1999_v33 = vsel %vm4264_vm7, %v1983_v52, %v1602_v15 }
 0x384   :  { %v1226_v35 = vsel %vm1225_vm4, %v2685_v27, %v1222_v13 }
 0x385   :  { %v1235_v12 = vmul.f32 %v1226_v35, %v3673_v51  ;;  %v1236_v56 = vmul.f32 %v1226_v35, %v3676_v55  ;;  %v1237_v31 = vmul.f32 %v1226_v35, %v3679_v57  ;;  %v1238_v38 = vmul.f32 %v1226_v35, %v3682_v61  ;;  %1931 = vrot.lane.b32.xlu1 %v1444_v53, %s2727_s18 }
 0x386   :  { %v1239_v47 = vmul.f32 %v1226_v35, %v3687_v63  ;;  %v1240_v3 = vmul.f32 %v1226_v35, %v3696_v11  ;;  %v1241_v25 = vmul.f32 %v1226_v35, %v3708_v22  ;;  %v1242_v41 = vmul.f32 %v1226_v35, %v3720_v29  ;;  %1867 = vrot.lane.b32.xlu0 %v1428_v43, %s2728_s19  ;;  %v3804_v51 = vpop.permute.xlu2 %1923 }
 0x387   :  { %vm1251_vm6 = vcmp.ge.f32.partialorder %v1235_v12, 0.0  ;;  %vm1252_vm8 = vcmp.ge.f32.partialorder %v1236_v56, 0.0  ;;  %vm1253_vm9 = vcmp.ge.f32.partialorder %v1237_v31, 0.0  ;;  %vm1254_vm11 = vcmp.ge.f32.partialorder %v1238_v38, 0.0  ;;  %v1794_v55 = vpop.permute.xlu1 %1793 }
 0x388   :  { %vm1255_vm1 = vcmp.ge.f32.partialorder %v1239_v47, 0.0  ;;  %vm1256_vm3 = vcmp.ge.f32.partialorder %v1240_v3, 0.0  ;;  %v1267_v57 = vmul.f32 0.01, %v1235_v12  ;;  %v1268_v61 = vmul.f32 0.01, %v1236_v56  ;;  %v1730_v11 = vpop.permute.xlu0 %1729 }
 0x389   :  { %v1269_v63 = vmul.f32 0.01, %v1237_v31  ;;  %v1270_v50 = vmul.f32 0.01, %v1238_v38  ;;  %v1271_v46 = vmul.f32 0.01, %v1239_v47  ;;  %v2015_v29 = vsel %vm938_vm10, %v1999_v33, %v3758_v37 }
 0x38a   :  { %v1272_v22 = vmul.f32 0.01, %v1240_v3  ;;  %v1273_v6 = vmul.f32 0.01, %v1241_v25  ;;  %v1283_v1 = vsel %vm1251_vm6, %v1235_v12, %v1267_v57  ;;  %v1284_v62 = vsel %vm1252_vm8, %v1236_v56, %v1268_v61 }
 0x38b   :  { %v2032_v17 = vsel %vm2029_vm12, %v2015_v29, %v1730_v11  ;;  %vm1257_vm4 = vcmp.ge.f32.partialorder %v1241_v25, 0.0  ;;  %v1274_v4 = vmul.f32 0.01, %v1242_v41  ;;  %v1285_v7 = vsel %vm1253_vm9, %v1237_v31, %v1269_v63  ;;  %1300 = vst.msk [vmem:[#allocation3 + $0xb1] sm:$0xff] %vm105_vm2, %v1283_v1 }
 0x38c   :  { %v1286_v60 = vsel %vm1254_vm11, %v1238_v38, %v1270_v50  ;;  %vm1258_vm7 = vcmp.ge.f32.partialorder %v1242_v41, 0.0  ;;  %v1287_v14 = vsel %vm1255_vm1, %v1239_v47, %v1271_v46  ;;  %1301 = vst.msk [vmem:[#allocation3 + $0xc1] sm:$0xff] %vm105_vm2, %v1284_v62  ;;  %v1288_v37 = vsel %vm1256_vm3, %v1240_v3, %v1272_v22 }
 0x38d   :  { %1302 = vst.msk [vmem:[#allocation3 + $0xd1] sm:$0xff] %vm105_vm2, %v1285_v7  ;;  %v2049_v54 = vsel %vm2046_vm13, %v2032_v17, %v1794_v55  ;;  %v1289_v18 = vsel %vm1257_vm4, %v1241_v25, %v1273_v6  ;;  %v1290_v42 = vsel %vm1258_vm7, %v1242_v41, %v1274_v4  ;;  %vm4265_vm7 = vcmask 195584   ;;  %v1332_v41 = vld [vmem:[#allocation3 + $0xa1] sm:$0xff] }
 0x38e   :  { %1303 = vst.msk [vmem:[#allocation3 + $0xe1] sm:$0xff] %vm105_vm2, %v1286_v60  ;;  %v1606_v21 = vpop.permute.xlu2 %1605  ;;  %v2066_v9 = vsel %vm2063_vm14, %v2049_v54, %v3767_v19  ;;  %vm4266_vm6 = vmmov %vm4265_vm7 }
 0x38f   :  { %1304 = vst.msk [vmem:[#allocation3 + $0xf1] sm:$0xff] %vm105_vm2, %v1287_v14  ;;  %v1476_v26 = vpop.permute.xlu1 %1475  ;;  %vm4267_vm8 = vmmov %vm4266_vm6 }
 0x390   :  { %1305 = vst.msk [vmem:[#allocation3 + $0x101] sm:$0xff] %vm105_vm2, %v1288_v37  ;;  %v1922_v36 = vpop.permute.xlu0 %1921  ;;  %v1968_v19 = vsel %vm105_vm2, %v3545_v0, %v1476_v26  ;;  %vm4268_vm9 = vmmov %vm4266_vm6 }
 0x391   :  { %1306 = vst.msk [vmem:[#allocation3 + $0x111] sm:$0xff] %vm105_vm2, %v1289_v18  ;;  %v2083_v24 = vsel %vm2080_vm15, %v2066_v9, %v1922_v36  ;;  %v1984_v32 = vsel %vm870_vm5, %v1968_v19, %v3777_v40  ;;  %vm4269_vm11 = vmmov %vm4266_vm6 }
 0x392   :  { %1307 = vst.msk [vmem:[#allocation3 + $0x121] sm:$0xff] %vm105_vm2, %v1290_v42  ;;  %2618 = vmatmul.msk.f32.gmra.mxu1 %vm2106_vm0, %v2083_v24  ;;  %v3889_v22 = vld [vmem:[#allocation3 + $0xb0] sm:$0xff]  ;;  %vm4270_vm1 = vmmov %vm4266_vm6 }
 0x393   :  { %v1380_v7 = vld [vmem:[#allocation3 + $0xb1] sm:$0xff]  ;;  %v3912_v36 = vld [vmem:[#allocation3 + $0xc0] sm:$0xff]  ;;  %vm4271_vm3 = vmmov %vm4270_vm1 }
 0x394   :  { %v3828_v34 = vld [vmem:[#allocation3 + $0xd2] sm:$0xff]  ;;  %vm4272_vm4 = vmmov %vm4270_vm1 }
 0x395   :  { %v3830_v27 = vld [vmem:[#allocation3 + $0xd1] sm:$0xff]  ;;  %v3832_v58 = vld [vmem:[#allocation3 + $0xe0] sm:$0xff]  ;;  %1555 = vrot.lane.b32.xlu0 %v3828_v34, %s2718_s26 }
 0x396   :  { %1491 = vrot.lane.b32.xlu2 %v3830_v27, %s2717_s0  ;;  %1619 = vrot.lane.b32.xlu1 %v3832_v58, %s2722_s30  ;;  %v1798_v16 = vpop.permute.xlu2 %1797  ;;  %v3845_v48 = vld [vmem:[#allocation3 + $0xe2] sm:$0xff]  ;;  %v3850_v15 = vld [vmem:[#allocation3 + $0xf0] sm:$0xff] }
 0x397   :  { %v1668_v20 = vpop.permute.xlu1 %1667  ;;  %v3847_v49 = vld [vmem:[#allocation3 + $0xe1] sm:$0xff]  ;;  %v1448_v35 = vld [vmem:[#allocation3 + $0xf2] sm:$0xff] }
 0x398   :  { %v1604_v23 = vpop.permute.xlu0 %1603  ;;  %v1432_v43 = vld [vmem:[#allocation3 + $0xf1] sm:$0xff]  ;;  %v3887_v46 = vld [vmem:[#allocation3 + $0x100] sm:$0xff] }
 0x399   :  { %v2000_v44 = vsel %vm4265_vm7, %v1984_v32, %v1604_v23  ;;  %v3891_v29 = vld [vmem:[#allocation3 + $0x101] sm:$0xff]  ;;  %vm4273_vm7 = vmmov %vm4270_vm1 }
 0x39a   :  { %v2016_v39 = vsel %vm938_vm10, %v2000_v44, %v1668_v20  ;;  %v3902_v60 = vld [vmem:[#allocation3 + $0x102] sm:$0xff] }
 0x39b   :  { %v2033_v40 = vsel %vm2029_vm12, %v2016_v39, %v3787_v59  ;;  %v1429_v23 = vld [vmem:[#allocation3 + $0xc1] sm:$0xff] }
 0x39d   :  { %1747 = vrot.lane.b32.xlu0 %v3845_v48, %s2726_s1 }
 0x39e   :  { %1683 = vrot.lane.b32.xlu2 %v3847_v49, %s2724_s7  ;;  %1811 = vrot.lane.b32.xlu1 %v3850_v15, %s2729_s20  ;;  %v1480_v13 = vpop.permute.xlu2 %1479 }
 0x39f   :  { %v1860_v0 = vpop.permute.xlu1 %1859  ;;  %v1970_v17 = vsel %vm105_vm2, %v3586_v10, %v1480_v13 }
 0x3a0   :  { %v1796_v2 = vpop.permute.xlu0 %1795 }
 0x3a1   :  { %v2050_v30 = vsel %vm2046_vm13, %v2033_v40, %v1796_v2  ;;  %v1445_v2 = vld [vmem:[#allocation3 + $0xc2] sm:$0xff] }
 0x3a2   :  { %v2067_v52 = vsel %vm2063_vm14, %v2050_v30, %v1860_v0 }
 0x3a3   :  { %v2084_v53 = vsel %vm2080_vm15, %v2067_v52, %v3804_v51  ;;  %v1348_v51 = vld [vmem:[#allocation3 + $0xa2] sm:$0xff] }
 0x3a4   :  { %2619 = vmatmul.msk.f32.gmra.mxu1 %vm2106_vm0, %v2084_v53 }
 0x3a5   :  { %1939 = vrot.lane.b32.xlu0 %v1448_v35, %s2727_s18 }
 0x3a6   :  { %1875 = vrot.lane.b32.xlu2 %v1432_v43, %s2728_s19  ;;  %1493 = vrot.lane.b32.xlu1 %v3847_v49, %s2717_s0  ;;  %v1672_v56 = vpop.permute.xlu2 %1671 }
 0x3a7   :  { %v1542_v59 = vpop.permute.xlu1 %1541 }
 0x3a8   :  { %v1478_v12 = vpop.permute.xlu0 %1477 }
 0x3a9   :  { %v1969_v31 = vsel %vm105_vm2, %v3558_v5, %v1478_v12  ;;  %v3940_v12 = vld [vmem:[#allocation3 + $0x110] sm:$0xff] }
 0x3aa   :  { %v1985_v38 = vsel %vm870_vm5, %v1969_v31, %v1542_v59 }
 0x3ab   :  { %v2001_v33 = vsel %vm4266_vm6, %v1985_v38, %v1606_v21  ;;  %v1396_v21 = vld [vmem:[#allocation3 + $0xb2] sm:$0xff]  ;;  %vm4274_vm6 = vmmov %vm4270_vm1 }
 0x3ad   :  { %1621 = vrot.lane.b32.xlu0 %v3850_v15, %s2722_s30 }
 0x3ae   :  { %1557 = vrot.lane.b32.xlu2 %v3845_v48, %s2718_s26  ;;  %1685 = vrot.lane.b32.xlu1 %v1432_v43, %s2724_s7  ;;  %v1864_v55 = vpop.permute.xlu2 %1863 }
 0x3af   :  { %v1734_v47 = vpop.permute.xlu1 %1733 }
 0x3b0   :  { %v1670_v3 = vpop.permute.xlu0 %1669 }
 0x3b1   :  { %v2017_v25 = vsel %vm938_vm10, %v2001_v33, %v1670_v3  ;;  %v1434_v3 = vld [vmem:[#allocation3 + $0x111] sm:$0xff] }
 0x3b2   :  { %v2034_v5 = vsel %vm2029_vm12, %v2017_v25, %v1734_v47  ;;  %v1450_v33 = vld [vmem:[#allocation3 + $0x112] sm:$0xff] }
 0x3b3   :  { %v2051_v61 = vsel %vm2046_vm13, %v2034_v5, %v1798_v16 }
 0x3b5   :  { %1749 = vrot.lane.b32.xlu0 %v1448_v35, %s2726_s1 }
 0x3b6   :  { %1485 = vrot.lane.b32.xlu2 %v1332_v41, %s2717_s0  ;;  %1549 = vrot.lane.b32.xlu1 %v1348_v51, %s2718_s26  ;;  %v1546_v6 = vpop.permute.xlu2 %1545 }
 0x3b7   :  { %v1926_v57 = vpop.permute.xlu1 %1925 }
 0x3b8   :  { %v1862_v63 = vpop.permute.xlu0 %1861 }
 0x3b9   :  { %v2068_v11 = vsel %vm2063_vm14, %v2051_v61, %v1862_v63 }
 0x3ba   :  { %v2085_v50 = vsel %vm2080_vm15, %v2068_v11, %v1926_v57 }
 0x3bb   :  { %2620 = vmatmul.msk.f32.gmra.mxu1 %vm2106_vm0, %v2085_v50 }
 0x3bd   :  { %1613 = vrot.lane.b32.xlu0 %v3889_v22, %s2722_s30 }
 0x3be   :  { %1813 = vrot.lane.b32.xlu2 %v3887_v46, %s2729_s20  ;;  %1877 = vrot.lane.b32.xlu1 %v3891_v29, %s2728_s19  ;;  %v1738_v18 = vpop.permute.xlu2 %1737 }
 0x3bf   :  { %v1608_v1 = vpop.permute.xlu1 %1607 }
 0x3c0   :  { %v1544_v62 = vpop.permute.xlu0 %1543 }
 0x3c1   :  { %v1986_v4 = vsel %vm870_vm5, %v1970_v17, %v1544_v62  ;;  %v1319_v62 = vld [vmem:[#allocation3 + $0xd0] sm:$0xff] }
 0x3c2   :  { %v2002_v14 = vsel %vm4267_vm8, %v1986_v4, %v1608_v1  ;;  %vm4275_vm8 = vmmov %vm4270_vm1 }
 0x3c3   :  { %v2018_v42 = vsel %vm938_vm10, %v2002_v14, %v1672_v56 }
 0x3c5   :  { %1941 = vrot.lane.b32.xlu0 %v3902_v60, %s2727_s18 }
 0x3c6   :  { %1677 = vrot.lane.b32.xlu2 %v1380_v7, %s2724_s7  ;;  %1495 = vrot.lane.b32.xlu1 %v1432_v43, %s2717_s0  ;;  %v1930_v20 = vpop.permute.xlu2 %1929 }
 0x3c7   :  { %v1800_v37 = vpop.permute.xlu1 %1799 }
 0x3c8   :  { %v1736_v54 = vpop.permute.xlu0 %1735 }
 0x3c9   :  { %v2035_v10 = vsel %vm2029_vm12, %v2018_v42, %v1736_v54 }
 0x3ca   :  { %v2052_v26 = vsel %vm2046_vm13, %v2035_v10, %v1800_v37  ;;  %v1419_v37 = vld [vmem:[#allocation3 + $0x120] sm:$0xff] }
 0x3cb   :  { %v2069_v19 = vsel %vm2063_vm14, %v2052_v26, %v1864_v55 }
 0x3cd   :  { %1559 = vrot.lane.b32.xlu0 %v1448_v35, %s2718_s26 }
 0x3ce   :  { %1741 = vrot.lane.b32.xlu2 %v1396_v21, %s2726_s1  ;;  %1805 = vrot.lane.b32.xlu1 %v3912_v36, %s2729_s20  ;;  %v1612_v13 = vpop.permute.xlu2 %1611 }
 0x3cf   :  { %v1482_v9 = vpop.permute.xlu1 %1481 }
 0x3d0   :  { %v1928_v24 = vpop.permute.xlu0 %1927  ;;  %v1971_v32 = vsel %vm105_vm2, %v3622_v45, %v1482_v9  ;;  %v1435_v9 = vld [vmem:[#allocation3 + $0x121] sm:$0xff] }
 0x3d1   :  { %v2086_v16 = vsel %vm2080_vm15, %v2069_v19, %v1928_v24  ;;  %v1987_v0 = vsel %vm870_vm5, %v1971_v32, %v1546_v6 }
 0x3d2   :  { %2621 = vmatmul.msk.f32.gmra.mxu1 %vm2106_vm0, %v2086_v16 }
 0x3d5   :  { %1869 = vrot.lane.b32.xlu0 %v1429_v23, %s2728_s19 }
 0x3d6   :  { %1623 = vrot.lane.b32.xlu2 %v3887_v46, %s2722_s30  ;;  %1687 = vrot.lane.b32.xlu1 %v3891_v29, %s2724_s7  ;;  %v1804_v56 = vpop.permute.xlu2 %1803 }
 0x3d7   :  { %v1674_v44 = vpop.permute.xlu1 %1673 }
 0x3d8   :  { %v1610_v39 = vpop.permute.xlu0 %1609 }
 0x3d9   :  { %v2003_v40 = vsel %vm4268_vm9, %v1987_v0, %v1610_v39  ;;  %vm4276_vm9 = vmmov %vm4270_vm1 }
 0x3da   :  { %v2019_v30 = vsel %vm938_vm10, %v2003_v40, %v1674_v44  ;;  %v1451_v44 = vld [vmem:[#allocation3 + $0x122] sm:$0xff] }
 0x3db   :  { %v2036_v52 = vsel %vm2029_vm12, %v2019_v30, %v1738_v18 }
 0x3dd   :  { %1487 = vrot.lane.b32.xlu0 %v1380_v7, %s2717_s0 }
 0x3de   :  { %1933 = vrot.lane.b32.xlu2 %v1445_v2, %s2727_s18  ;;  %1751 = vrot.lane.b32.xlu1 %v3902_v60, %s2726_s1 }
 0x3df   :  { %v1866_v45 = vpop.permute.xlu1 %1865 }
 0x3e0   :  { %v1802_v53 = vpop.permute.xlu0 %1801 }
 0x3e1   :  { %v2053_v35 = vsel %vm2046_vm13, %v2036_v52, %v1802_v53 }
 0x3e2   :  { %v2070_v43 = vsel %vm2063_vm14, %v2053_v35, %v1866_v45 }
 0x3e3   :  { %v2087_v59 = vsel %vm2080_vm15, %v2070_v43, %v1930_v20  ;;  %v1420_v43 = vld [vmem:[#allocation3 + $0x130] sm:$0xff] }
 0x3e4   :  { %2622 = vmatmul.msk.f32.gmra.mxu1 %vm2106_vm0, %v2087_v59 }
 0x3e5   :  { %1815 = vrot.lane.b32.xlu0 %v3940_v12, %s2729_s20 }
 0x3e6   :  { %1551 = vrot.lane.b32.xlu2 %v1396_v21, %s2718_s26  ;;  %1615 = vrot.lane.b32.xlu1 %v3912_v36, %s2722_s30 }
 0x3e7   :  { %v1548_v31 = vpop.permute.xlu1 %1547 }
 0x3e8   :  { %v1484_v38 = vpop.permute.xlu0 %1483 }
 0x3e9   :  { %v1972_v47 = vsel %vm105_vm2, %v3705_v8, %v1484_v38 }
 0x3ea   :  { %v1988_v25 = vsel %vm870_vm5, %v1972_v47, %v1548_v31 }
 0x3eb   :  { %v2004_v5 = vsel %vm4269_vm11, %v1988_v25, %v1612_v13  ;;  %v1316_v25 = vld [vmem:[#allocation3 + $0xa0] sm:$0xff]  ;;  %vm4277_vm11 = vmmov %vm4270_vm1 }
 0x3ed   :  { %1679 = vrot.lane.b32.xlu0 %v1429_v23, %s2724_s7 }
 0x3ee   :  { %1879 = vrot.lane.b32.xlu2 %v1434_v3, %s2728_s19  ;;  %1943 = vrot.lane.b32.xlu1 %v1450_v33, %s2727_s18 }
 0x3ef   :  { %v1740_v51 = vpop.permute.xlu1 %1739 }
 0x3f0   :  { %v1492_v41 = vpop.permute.xlu2 %1491  ;;  %v1676_v55 = vpop.permute.xlu0 %1675 }
 0x3f1   :  { %v2020_v57 = vsel %vm938_vm10, %v2004_v5, %v1676_v55 }
 0x3f2   :  { %v2037_v61 = vsel %vm2029_vm12, %v2020_v57, %v1740_v51 }
 0x3f3   :  { %v2054_v11 = vsel %vm2046_vm13, %v2037_v61, %v1804_v56  ;;  %v1436_v56 = vld [vmem:[#allocation3 + $0x131] sm:$0xff]  ;;  %v4019_v61 = vpop.f32.mrf.mxu1 }
 0x3f5   :  { %1743 = vrot.lane.b32.xlu0 %v1445_v2, %s2726_s1 }
 0x3f6   :  { %1497 = vrot.lane.b32.xlu2 %v3891_v29, %s2717_s0  ;;  %1561 = vrot.lane.b32.xlu1 %v3902_v60, %s2718_s26  ;;  %v1976_v60 = vsel %vm105_vm2, %v1319_v62, %v1492_v41 }
 0x3f7   :  { %v1932_v63 = vpop.permute.xlu1 %1931 }
 0x3f8   :  { %v1684_v8 = vpop.permute.xlu2 %1683  ;;  %v1868_v50 = vpop.permute.xlu0 %1867 }
 0x3f9   :  { %v2071_v6 = vsel %vm2063_vm14, %v2054_v11, %v1868_v50 }
 0x3fa   :  { %v2088_v1 = vsel %vm2080_vm15, %v2071_v6, %v1932_v63 }
 0x3fb   :  { %2623 = vmatmul.msk.f32.gmra.mxu1 %vm2106_vm0, %v2088_v1 }
 0x3fd   :  { %1625 = vrot.lane.b32.xlu0 %v3940_v12, %s2722_s30 }
 0x3fe   :  { %1807 = vrot.lane.b32.xlu2 %v1319_v62, %s2729_s20  ;;  %1871 = vrot.lane.b32.xlu1 %v3830_v27, %s2728_s19 }
 0x400   :  { %v1876_v29 = vpop.permute.xlu2 %1875 }
 0x405   :  { %1935 = vrot.lane.b32.xlu0 %v3828_v34, %s2727_s18 }
 0x406   :  { %1689 = vrot.lane.b32.xlu2 %v1434_v3, %s2724_s7  ;;  %1489 = vrot.lane.b32.xlu1 %v1429_v23, %s2717_s0 }
 0x407   :  { %v1556_v4 = vpop.permute.xlu0 %1555 }
 0x408   :  { %v1558_v17 = vpop.permute.xlu2 %1557  ;;  %v1620_v7 = vpop.permute.xlu1 %1619  ;;  %v1992_v14 = vsel %vm870_vm5, %v1976_v60, %v1556_v4 }
 0x409   :  { %v2008_v54 = vsel %vm4270_vm1, %v1992_v14, %v1620_v7 }
 0x40a   :  { %v2024_v21 = vsel %vm938_vm10, %v2008_v54, %v1684_v8 }
 0x40d   :  { %1553 = vrot.lane.b32.xlu0 %v1445_v2, %s2718_s26 }
 0x40e   :  { %1753 = vrot.lane.b32.xlu2 %v1450_v33, %s2726_s1  ;;  %1817 = vrot.lane.b32.xlu1 %v1419_v37, %s2729_s20 }
 0x40f   :  { %v1748_v10 = vpop.permute.xlu0 %1747 }
 0x410   :  { %v1486_v18 = vpop.permute.xlu2 %1485  ;;  %v1812_v42 = vpop.permute.xlu1 %1811  ;;  %v2041_v26 = vsel %vm2029_vm12, %v2024_v21, %v1748_v10 }
 0x411   :  { %v2058_v24 = vsel %vm2046_vm13, %v2041_v26, %v1812_v42  ;;  %v1973_v41 = vsel %vm105_vm2, %v1316_v25, %v1486_v18 }
 0x412   :  { %v2075_v20 = vsel %vm2063_vm14, %v2058_v24, %v1876_v29  ;;  %v4025_v29 = vpop.f32.mrf.mxu1 }
 0x415   :  { %1881 = vrot.lane.b32.xlu0 %v1435_v9, %s2728_s19 }
 0x416   :  { %1617 = vrot.lane.b32.xlu2 %v1319_v62, %s2722_s30  ;;  %1681 = vrot.lane.b32.xlu1 %v3830_v27, %s2724_s7 }
 0x417   :  { %v1940_v23 = vpop.permute.xlu0 %1939 }
 0x418   :  { %v1814_v19 = vpop.permute.xlu2 %1813  ;;  %v1494_v16 = vpop.permute.xlu1 %1493  ;;  %v2092_v32 = vsel %vm2080_vm15, %v2075_v20, %v1940_v23 }
 0x419   :  { %2627 = vmatmul.msk.f32.vlgmr.msrb.gmra.mxu3 %vm2106_vm0, %v2092_v32  ;;  %v1977_v30 = vsel %vm105_vm2, %v3832_v58, %v1494_v16 }
 0x41d   :  { %1499 = vrot.lane.b32.xlu0 %v1434_v3, %s2717_s0 }
 0x41e   :  { %1945 = vrot.lane.b32.xlu2 %v1451_v44, %s2727_s18  ;;  %1745 = vrot.lane.b32.xlu1 %v3828_v34, %s2726_s1  ;;  %v1993_v34 = vsel %vm870_vm5, %v1977_v30, %v1558_v17  ;;  %v2220_v30 = vsel %vm105_vm2, %v4019_v61, 0.0 }
 0x41f   :  { %v1622_v27 = vpop.permute.xlu0 %1621 }
 0x420   :  { %v1678_v39 = vpop.permute.xlu2 %1677  ;;  %v1686_v0 = vpop.permute.xlu1 %1685  ;;  %v2009_v52 = vsel %vm4271_vm3, %v1993_v34, %v1622_v27 }
 0x421   :  { %v2025_v59 = vsel %vm938_vm10, %v2009_v52, %v1686_v0 }
 0x425   :  { %1809 = vrot.lane.b32.xlu0 %v3832_v58, %s2729_s20 }
 0x426   :  { %1563 = vrot.lane.b32.xlu2 %v1450_v33, %s2718_s26  ;;  %1627 = vrot.lane.b32.xlu1 %v1419_v37, %s2722_s30  ;;  %v1452_v33 = vld [vmem:[#allocation3 + $0x132] sm:$0xff]  ;;  %v4030_v37 = vpop.f32.mrf.mxu1 }
 0x427   :  { %v1750_v13 = vpop.permute.xlu0 %1749  ;;  %v2223_v34 = vsel %vm105_vm2, %v4030_v37, 0.0 }
 0x428   :  { %v1742_v40 = vpop.permute.xlu2 %1741  ;;  %v1550_v2 = vpop.permute.xlu1 %1549  ;;  %v2042_v58 = vsel %vm2029_vm12, %v2025_v59, %v1750_v13 }
 0x429   :  { %v1989_v55 = vsel %vm870_vm5, %v1973_v41, %v1550_v2  ;;  %v2221_v2 = vsel %vm105_vm2, %v4025_v29, 0.0 }
 0x42a   :  { %v2222_v52 = vadd.f32 %v2221_v2, %v2220_v30 }
 0x42c   :  { %v2224_v59 = vadd.f32 %v2223_v34, %v2222_v52 }
 0x42d   :  { %1691 = vrot.lane.b32.xlu0 %v1435_v9, %s2724_s7 }
 0x42e   :  { %1873 = vrot.lane.b32.xlu2 %v3847_v49, %s2728_s19  ;;  %1937 = vrot.lane.b32.xlu1 %v3845_v48, %s2727_s18  ;;  %v2059_v48 = vsel %vm2046_vm13, %v2042_v58, %v1814_v19  ;;  %v4035_v21 = vpop.f32.mrf.mxu1 }
 0x42f   :  { %v1614_v35 = vpop.permute.xlu0 %1613 }
 0x430   :  { %v1624_v45 = vpop.permute.xlu2 %1623  ;;  %v1878_v53 = vpop.permute.xlu1 %1877  ;;  %v2005_v8 = vsel %vm4272_vm4, %v1989_v55, %v1614_v35 }
 0x431   :  { %v2076_v31 = vsel %vm2063_vm14, %v2059_v48, %v1878_v53  ;;  %v2021_v63 = vsel %vm938_vm10, %v2005_v8, %v1678_v39  ;;  %v2225_v53 = vsel %vm105_vm2, %v4035_v21, 0.0 }
 0x432   :  { %v2038_v11 = vsel %vm2029_vm12, %v2021_v63, %v1742_v40 }
 0x435   :  { %1819 = vrot.lane.b32.xlu0 %v1420_v43, %s2729_s20 }
 0x436   :  { %1755 = vrot.lane.b32.xlu2 %v1451_v44, %s2726_s1  ;;  %1883 = vrot.lane.b32.xlu1 %v1436_v56, %s2728_s19  ;;  %s2730_s1 = smov [#allocation4]   ;;  %s2731_s19 = smov 128  }
 0x437   :  { %v1942_v47 = vpop.permute.xlu0 %1941 }
 0x438   :  { %v1934_v49 = vpop.permute.xlu2 %1933  ;;  %v1496_v38 = vpop.permute.xlu1 %1495  ;;  %v2093_v3 = vsel %vm2080_vm15, %v2076_v31, %v1942_v47  ;;  %v2226_v31 = vadd.f32 %v2225_v53, %v2224_v59 }
 0x439   :  { %2628 = vmatmul.msk.f32.gmra.mxu3 %vm2106_vm0, %v2093_v3  ;;  %v1978_v54 = vsel %vm105_vm2, %v3850_v15, %v1496_v38  ;;  %v4042_v15 = vpop.f32.mrf.mxu1 }
 0x43a   :  { %v2227_v48 = vsel %vm105_vm2, %v4042_v15, 0.0 }
 0x43b   :  { %v2228_v3 = vadd.f32 %v2227_v48, %v2226_v31 }
 0x43e   :  { %1947 = vrot.lane.b32.xlu2 %v1452_v33, %s2727_s18  ;;  %s2582_s18 = sshll.u32 %s2730_s1, 4  ;;  %s2583_s18 = int_to_ptr.vmem [resolvable:$true] %s2582_s18 }
 0x43f   :  { %v1560_v57 = vpop.permute.xlu0 %1559 }
 0x440   :  { %v1552_v51 = vpop.permute.xlu2 %1551  ;;  %v1806_v5 = vpop.permute.xlu1 %1805  ;;  %v1994_v18 = vsel %vm870_vm5, %v1978_v54, %v1560_v57 }
 0x441   :  { %v2055_v6 = vsel %vm2046_vm13, %v2038_v11, %v1806_v5  ;;  %v2010_v9 = vsel %vm4273_vm7, %v1994_v18, %v1624_v45 }
 0x447   :  { %v1870_v62 = vpop.permute.xlu0 %1869 }
 0x448   :  { %v1880_v50 = vpop.permute.xlu2 %1879  ;;  %v1688_v1 = vpop.permute.xlu1 %1687  ;;  %v2072_v17 = vsel %vm2063_vm14, %v2055_v6, %v1870_v62 }
 0x449   :  { %v2089_v4 = vsel %vm2080_vm15, %v2072_v17, %v1934_v49  ;;  %v2026_v24 = vsel %vm938_vm10, %v2010_v9, %v1688_v1 }
 0x44a   :  { %2624 = vmatmul.msk.f32.gmra.mxu1 %vm2106_vm0, %v2089_v4 }
 0x44f   :  { %v1488_v14 = vpop.permute.xlu0 %1487  ;;  %v4046_v40 = vpop.f32.mrf.mxu1 }
 0x450   :  { %v1498_v7 = vpop.permute.xlu2 %1497  ;;  %v1752_v60 = vpop.permute.xlu1 %1751  ;;  %v1974_v45 = vsel %vm105_vm2, %v3889_v22, %v1488_v14  ;;  %v2229_v22 = vsel %vm105_vm2, %v4046_v40, 0.0 }
 0x451   :  { %v2043_v19 = vsel %vm2029_vm12, %v2026_v24, %v1752_v60  ;;  %v1990_v56 = vsel %vm870_vm5, %v1974_v45, %v1552_v51  ;;  %v2230_v25 = vadd.f32 %v2229_v22, %v2228_v3  ;;  %v1979_v62 = vsel %vm105_vm2, %v3887_v46, %v1498_v7 }
 0x457   :  { %v1816_v10 = vpop.permute.xlu0 %1815 }
 0x458   :  { %v1616_v42 = vpop.permute.xlu1 %1615  ;;  %v1808_v26 = vpop.permute.xlu2 %1807  ;;  %v2060_v16 = vsel %vm2046_vm13, %v2043_v19, %v1816_v10 }
 0x459   :  { %v2077_v32 = vsel %vm2063_vm14, %v2060_v16, %v1880_v50  ;;  %v2006_v49 = vsel %vm4274_vm6, %v1990_v56, %v1616_v42 }
 0x45f   :  { %v1680_v23 = vpop.permute.xlu0 %1679 }
 0x460   :  { %v1944_v20 = vpop.permute.xlu1 %1943  ;;  %v1690_v39 = vpop.permute.xlu2 %1689  ;;  %v2022_v38 = vsel %vm938_vm10, %v2006_v49, %v1680_v23 }
 0x461   :  { %v2094_v44 = vsel %vm2080_vm15, %v2077_v32, %v1944_v20  ;;  %v2190_v58 = vpop.f32.mrf.mxu1 }
 0x462   :  { %2629 = vmatmul.msk.f32.gmra.mxu3 %vm2106_vm0, %v2094_v44  ;;  %v2231_v33 = vsel %vm105_vm2, %v2190_v58, 0.0 }
 0x463   :  { %v2232_v8 = vadd.f32 %v2231_v33, %v2230_v25 }
 0x467   :  { %v1744_v27 = vpop.permute.xlu0 %1743 }
 0x468   :  { %v1562_v0 = vpop.permute.xlu1 %1561  ;;  %v1754_v13 = vpop.permute.xlu2 %1753  ;;  %v2039_v47 = vsel %vm2029_vm12, %v2022_v38, %v1744_v27 }
 0x469   :  { %v2056_v41 = vsel %vm2046_vm13, %v2039_v47, %v1808_v26  ;;  %v1995_v4 = vsel %vm870_vm5, %v1979_v62, %v1562_v0 }
 0x46f   :  { %v1626_v43 = vpop.permute.xlu0 %1625 }
 0x470   :  { %v1872_v35 = vpop.permute.xlu1 %1871  ;;  %v4068_v51 = vpop.permute.xlu2 %1617  ;;  %v2011_v54 = vsel %vm4275_vm8, %v1995_v4, %v1626_v43 }
 0x471   :  { %v2073_v55 = vsel %vm2063_vm14, %v2056_v41, %v1872_v35  ;;  %v2027_v26 = vsel %vm938_vm10, %v2011_v54, %v1690_v39 }
 0x472   :  { %v2044_v19 = vsel %vm2029_vm12, %v2027_v26, %v1754_v13 }
 0x477   :  { %v1936_v57 = vpop.permute.xlu0 %1935 }
 0x478   :  { %v1490_v5 = vpop.permute.xlu1 %1489  ;;  %v2193_v63 = vpop.f32.mrf.mxu1  ;;  %v2090_v11 = vsel %vm2080_vm15, %v2073_v55, %v1936_v57 }
 0x479   :  { %v2233_v50 = vsel %vm105_vm2, %v2193_v63, 0.0  ;;  %2625 = vmatmul.msk.f32.gmra.mxu1 %vm2106_vm0, %v2090_v11  ;;  %v1946_v18 = vpop.permute.xlu2 %1945  ;;  %v1975_v47 = vsel %vm105_vm2, %v3912_v36, %v1490_v5 }
 0x47a   :  { %v2234_v6 = vadd.f32 %v2233_v50, %v2232_v8 }
 0x47c   :  { %v2235_v1 = vrot.slane %v2234_v6, 4 }
 0x47e   :  { %v2236_v17 = vadd.f32 %v2235_v1, %v2234_v6 }
 0x47f   :  { %v1554_v14 = vpop.permute.xlu0 %1553 }
 0x480   :  { %v1818_v60 = vpop.permute.xlu1 %1817  ;;  %v2237_v42 = vrot.slane %v2236_v17, 2  ;;  %v1991_v41 = vsel %vm870_vm5, %v1975_v47, %v1554_v14 }
 0x481   :  { %v2061_v16 = vsel %vm2046_vm13, %v2044_v19, %v1818_v60  ;;  %v1564_v2 = vpop.permute.xlu2 %1563  ;;  %v2007_v50 = vsel %vm4276_vm9, %v1991_v41, %v4068_v51  ;;  %v2426_v51 = vld [vmem:[%s4261_s3] sm:$0xff] }
 0x482   :  { %v2238_v10 = vadd.f32 %v2237_v42, %v2236_v17  ;;  %2494 = vmatpush.msra.mxu2 %v2426_v51  ;;  %2662 = vmatpush.msra.mxu3 %v2426_v51 }
 0x484   :  { %v2239_v9 = vrot.slane %v2238_v10, 1 }
 0x486   :  { %v2240_v24 = vadd.f32 %v2239_v9, %v2238_v10 }
 0x487   :  { %v1882_v46 = vpop.permute.xlu0 %1881 }
 0x488   :  { %v1682_v20 = vpop.permute.xlu1 %1681  ;;  %v2262_v7 = vmul.f32 %v2240_v24, %v3442_v28  ;;  %v2078_v23 = vsel %vm2063_vm14, %v2061_v16, %v1882_v46 }
 0x489   :  { %v2095_v32 = vsel %vm2080_vm15, %v2078_v23, %v1946_v18  ;;  %v1874_v22 = vpop.permute.xlu2 %1873  ;;  %v2023_v36 = vsel %vm938_vm10, %v2007_v50, %v1682_v20 }
 0x48a   :  { %v4085_v44 = vsub.f32 %v4019_v61, %v2262_v7  ;;  %v4088_v0 = vsub.f32 %v4025_v29, %v2262_v7  ;;  %v4091_v39 = vsub.f32 %v4030_v37, %v2262_v7  ;;  %v4094_v27 = vsub.f32 %v4035_v21, %v2262_v7  ;;  %2630 = vmatmul.msk.f32.gmra.mxu3 %vm2106_vm0, %v2095_v32 }
 0x48b   :  { %v4098_v13 = vsub.f32 %v4042_v15, %v2262_v7  ;;  %v4107_v37 = vsub.f32 %v4046_v40, %v2262_v7  ;;  %v4113_v35 = vsub.f32 %v2190_v58, %v2262_v7  ;;  %v4118_v40 = vsub.f32 %v2193_v63, %v2262_v7 }
 0x48c   :  { %v2280_v30 = vmul.f32 %v4085_v44, %v4085_v44  ;;  %v2281_v61 = vmul.f32 %v4088_v0, %v4088_v0  ;;  %v2282_v29 = vmul.f32 %v4091_v39, %v4091_v39  ;;  %v2283_v21 = vmul.f32 %v4094_v27, %v4094_v27 }
 0x48d   :  { %v2284_v43 = vmul.f32 %v4098_v13, %v4098_v13  ;;  %v2285_v48 = vmul.f32 %v4107_v37, %v4107_v37  ;;  %v2286_v38 = vmul.f32 %v4113_v35, %v4113_v35  ;;  %v2287_v33 = vmul.f32 %v4118_v40, %v4118_v40 }
 0x48e   :  { %v2296_v34 = vsel %vm105_vm2, %v2280_v30, 0.0  ;;  %v2297_v15 = vsel %vm105_vm2, %v2281_v61, 0.0  ;;  %v2299_v59 = vsel %vm105_vm2, %v2282_v29, 0.0  ;;  %v2301_v49 = vsel %vm105_vm2, %v2283_v21, 0.0 }
 0x48f   :  { %v2298_v45 = vadd.f32 %v2297_v15, %v2296_v34  ;;  %v1500_v53 = vpop.permute.xlu0 %1499  ;;  %v2303_v58 = vsel %vm105_vm2, %v2284_v43, 0.0  ;;  %v2305_v25 = vsel %vm105_vm2, %v2285_v48, 0.0  ;;  %v2307_v63 = vsel %vm105_vm2, %v2286_v38, 0.0 }
 0x490   :  { %v1746_v52 = vpop.permute.xlu1 %1745  ;;  %v2309_v6 = vsel %vm105_vm2, %v2287_v33, 0.0  ;;  %v1980_v14 = vsel %vm105_vm2, %v3940_v12, %v1500_v53 }
 0x491   :  { %v2300_v56 = vadd.f32 %v2299_v59, %v2298_v45  ;;  %v2040_v1 = vsel %vm2029_vm12, %v2023_v36, %v1746_v52  ;;  %v1756_v4 = vpop.permute.xlu2 %1755  ;;  %v1996_v9 = vsel %vm870_vm5, %v1980_v14, %v1564_v2 }
 0x493   :  { %v2302_v31 = vadd.f32 %v2301_v49, %v2300_v56 }
 0x495   :  { %v2304_v3 = vadd.f32 %v2303_v58, %v2302_v31 }
 0x497   :  { %v2306_v55 = vadd.f32 %v2305_v25, %v2304_v3  ;;  %v1810_v8 = vpop.permute.xlu0 %1809 }
 0x498   :  { %v1628_v57 = vpop.permute.xlu1 %1627  ;;  %v2057_v62 = vsel %vm2046_vm13, %v2040_v1, %v1810_v8 }
 0x499   :  { %v2308_v11 = vadd.f32 %v2307_v63, %v2306_v55  ;;  %v2074_v42 = vsel %vm2063_vm14, %v2057_v62, %v1874_v22  ;;  %v2012_v12 = vsel %vm4277_vm11, %v1996_v9, %v1628_v57  ;;  %v1948_v20 = vpop.permute.xlu2 %1947 }
 0x49b   :  { %v2310_v5 = vadd.f32 %v2309_v6, %v2308_v11 }
 0x49c   :  { %v2205_v11 = vpop.f32.mrf.mxu3 }
 0x49d   :  { %v2311_v17 = vrot.slane %v2310_v5, 4 }
 0x49f   :  { %v2312_v60 = vadd.f32 %v2311_v17, %v2310_v5  ;;  %v1692_v18 = vpop.permute.xlu0 %1691 }
 0x4a0   :  { %v1938_v54 = vpop.permute.xlu1 %1937  ;;  %v2028_v19 = vsel %vm938_vm10, %v2012_v12, %v1692_v18 }
 0x4a1   :  { %v2091_v10 = vsel %vm2080_vm15, %v2074_v42, %v1938_v54  ;;  %v2313_v26 = vrot.slane %v2312_v60, 2  ;;  %v2045_v7 = vsel %vm2029_vm12, %v2028_v19, %v1756_v4  ;;  %v2246_v54 = vsel %vm105_vm2, %v2205_v11, 0.0 }
 0x4a2   :  { %2626 = vmatmul.msk.f32.gmra.mxu1 %vm2106_vm0, %v2091_v10 }
 0x4a3   :  { %v2314_v24 = vadd.f32 %v2313_v26, %v2312_v60 }
 0x4a5   :  { %v2315_v16 = vrot.slane %v2314_v24, 1 }
 0x4a7   :  { %v2316_v46 = vadd.f32 %v2315_v16, %v2314_v24  ;;  %v1820_v23 = vpop.permute.xlu0 %1819 }
 0x4a8   :  { %v1884_v32 = vpop.permute.xlu1 %1883  ;;  %v2062_v30 = vsel %vm2046_vm13, %v2045_v7, %v1820_v23 }
 0x4a9   :  { %v2338_v61 = vmul.f32 %v2316_v46, %v3442_v28  ;;  %v2079_v29 = vsel %vm2063_vm14, %v2062_v30, %v1884_v32 }
 0x4aa   :  { %v2096_v2 = vsel %vm2080_vm15, %v2079_v29, %v1948_v20 }
 0x4ab   :  { %v2340_v21 = vadd.f32 1e-05, %v2338_v61  ;;  %2631 = vmatmul.msk.f32.gmra.mxu3 %vm2106_vm0, %v2096_v2 }
 0x4ad   :  { %2686 = vrsqrt.f32 %v2340_v21  ;;  %vm2348_vm10 = vweird.f32 %v2340_v21 }
 0x4b3   :  { %v2687_v34 = vpop.eup %2686 }
 0x4b4   :  { %v2343_v15 = vmul.f32 %v2687_v34, %v2340_v21  ;;  %vm2349_vm5 = vweird.f32 %v2687_v34 }
 0x4b5   :  { %vm2350_vm12 = vmor %vm2348_vm10, %vm2349_vm5 }
 0x4b6   :  { %v2344_v45 = vmul.f32 %v2687_v34, %v2343_v15 }
 0x4b8   :  { %v2345_v52 = vmul.f32 0.5, %v2344_v45 }
 0x4ba   :  { %v2346_v53 = vsub.f32 1.5, %v2345_v52 }
 0x4bc   :  { %v2347_v43 = vmul.f32 %v2687_v34, %v2346_v53  ;;  %v2208_v6 = vpop.f32.mrf.mxu3 }
 0x4bd   :  { %v2248_v42 = vsel %vm105_vm2, %v2208_v6, 0.0 }
 0x4be   :  { %v2351_v59 = vsel %vm2350_vm12, %v2687_v34, %v2347_v43 }
 0x4bf   :  { %v2369_v56 = vmul.f32 %v2351_v59, %v4118_v40  ;;  %v2362_v48 = vmul.f32 %v2351_v59, %v4085_v44  ;;  %v2364_v49 = vmul.f32 %v2351_v59, %v4091_v39  ;;  %v2365_v31 = vmul.f32 %v2351_v59, %v4094_v27 }
 0x4c0   :  { %v2366_v38 = vmul.f32 %v2351_v59, %v4098_v13  ;;  %v2367_v58 = vmul.f32 %v2351_v59, %v4107_v37  ;;  %v2368_v22 = vmul.f32 %v2351_v59, %v4113_v35  ;;  %v2363_v33 = vmul.f32 %v2351_v59, %v4088_v0 }
 0x4c1   :  { %vm2378_vm13 = vcmp.ge.f32.partialorder %v2362_v48, 0.0  ;;  %v2394_v47 = vmul.f32 0.01, %v2362_v48  ;;  %v2396_v39 = vmul.f32 0.01, %v2364_v49  ;;  %vm2380_vm15 = vcmp.ge.f32.partialorder %v2364_v49, 0.0 }
 0x4c2   :  { %v2395_v40 = vmul.f32 0.01, %v2363_v33  ;;  %vm2379_vm14 = vcmp.ge.f32.partialorder %v2363_v33, 0.0  ;;  %v2397_v13 = vmul.f32 0.01, %v2365_v31  ;;  %vm2381_vm0 = vcmp.ge.f32.partialorder %v2365_v31, 0.0 }
 0x4c3   :  { %v2410_v3 = vsel %vm2378_vm13, %v2362_v48, %v2394_v47  ;;  %v2412_v27 = vsel %vm2380_vm15, %v2364_v49, %v2396_v39  ;;  %v2398_v35 = vmul.f32 0.01, %v2366_v38  ;;  %vm2382_vm1 = vcmp.ge.f32.partialorder %v2366_v38, 0.0 }
 0x4c4   :  { %2632 = vmatmul.msk.f32.vlgmr.msra.gmra.mxu2 %vm105_vm2, %v2410_v3  ;;  %v2411_v44 = vsel %vm2379_vm14, %v2363_v33, %v2395_v40  ;;  %v2413_v37 = vsel %vm2381_vm0, %v2365_v31, %v2397_v13  ;;  %v2399_v25 = vmul.f32 0.01, %v2367_v58  ;;  %vm2383_vm3 = vcmp.ge.f32.partialorder %v2367_v58, 0.0  ;;  %v4204_v31 = vld [vmem:[%s4262_s4] ss:$0 sm:$0xff] }
 0x4c5   :  { %v2414_v0 = vsel %vm2382_vm1, %v2366_v38, %v2398_v35  ;;  %v2400_v55 = vmul.f32 0.01, %v2368_v22  ;;  %vm2384_vm4 = vcmp.ge.f32.partialorder %v2368_v22, 0.0  ;;  %v2401_v8 = vmul.f32 0.01, %v2369_v56 }
 0x4c6   :  { %v2415_v41 = vsel %vm2383_vm3, %v2367_v58, %v2399_v25  ;;  %vm2385_vm7 = vcmp.ge.f32.partialorder %v2369_v56, 0.0 }
 0x4c7   :  { %v2416_v57 = vsel %vm2384_vm4, %v2368_v22, %v2400_v55  ;;  %v2417_v63 = vsel %vm2385_vm7, %v2369_v56, %v2401_v8  ;;  %v2196_v50 = vpop.f32.mrf.mxu1 }
 0x4c8   :  { %v2241_v1 = vsel %vm105_vm2, %v2196_v50, 0.0 }
 0x4cc   :  { %2633 = vmatmul.msk.f32.gmra.mxu2 %vm105_vm2, %v2411_v44 }
 0x4d4   :  { %2634 = vmatmul.msk.f32.gmra.mxu2 %vm105_vm2, %v2412_v27 }
 0x4dc   :  { %2635 = vmatmul.msk.f32.gmra.mxu2 %vm105_vm2, %v2413_v37 }
 0x4e4   :  { %2636 = vmatmul.msk.f32.gmra.mxu2 %vm105_vm2, %v2414_v0 }
 0x4e5   :  { %v2211_v62 = vpop.f32.mrf.mxu3 }
 0x4e6   :  { %v2250_v26 = vsel %vm105_vm2, %v2211_v62, 0.0 }
 0x4ec   :  { %2637 = vmatmul.msk.f32.gmra.mxu2 %vm105_vm2, %v2415_v41 }
 0x4f4   :  { %2638 = vmatmul.msk.f32.gmra.mxu2 %vm105_vm2, %v2416_v57 }
 0x4f6   :  { %v2199_v36 = vpop.f32.mrf.mxu1 }
 0x4f7   :  { %v2242_v5 = vsel %vm105_vm2, %v2199_v36, 0.0 }
 0x4f8   :  { %v2243_v17 = vadd.f32 %v2242_v5, %v2241_v1 }
 0x4fc   :  { %2639 = vmatmul.msk.f32.gmra.mxu2 %vm105_vm2, %v2417_v63 }
 0x50d   :  { %v2214_v51 = vpop.f32.mrf.mxu3 }
 0x50e   :  { %v2252_v24 = vsel %vm105_vm2, %v2214_v51, 0.0 }
 0x51f   :  { %v2202_v4 = vpop.f32.mrf.mxu1 }
 0x520   :  { %v2244_v60 = vsel %vm105_vm2, %v2202_v4, 0.0 }
 0x521   :  { %v2245_v14 = vadd.f32 %v2244_v60, %v2243_v17 }
 0x523   :  { %v2247_v18 = vadd.f32 %v2246_v54, %v2245_v14 }
 0x525   :  { %v2249_v10 = vadd.f32 %v2248_v42, %v2247_v18 }
 0x527   :  { %v2251_v9 = vadd.f32 %v2250_v26, %v2249_v10 }
 0x529   :  { %v2253_v19 = vadd.f32 %v2252_v24, %v2251_v9 }
 0x52e   :  { %v2217_v12 = vpop.f32.mrf.mxu3 }
 0x52f   :  { %v2254_v16 = vsel %vm105_vm2, %v2217_v12, 0.0 }
 0x530   :  { %v2255_v20 = vadd.f32 %v2254_v16, %v2253_v19 }
 0x532   :  { %v2256_v46 = vrot.slane %v2255_v20, 4 }
 0x534   :  { %v2257_v7 = vadd.f32 %v2256_v46, %v2255_v20 }
 0x536   :  { %v2258_v23 = vrot.slane %v2257_v7, 2 }
 0x538   :  { %v2259_v32 = vadd.f32 %v2258_v23, %v2257_v7 }
 0x53a   :  { %v2260_v30 = vrot.slane %v2259_v32, 1 }
 0x53c   :  { %v2261_v61 = vadd.f32 %v2260_v30, %v2259_v32 }
 0x53e   :  { %v2263_v29 = vmul.f32 %v2261_v61, %v3442_v28 }
 0x540   :  { %v4181_v2 = vsub.f32 %v2196_v50, %v2263_v29  ;;  %v4183_v21 = vsub.f32 %v2199_v36, %v2263_v29  ;;  %v4185_v34 = vsub.f32 %v2202_v4, %v2263_v29  ;;  %v4187_v15 = vsub.f32 %v2205_v11, %v2263_v29 }
 0x541   :  { %v4189_v45 = vsub.f32 %v2208_v6, %v2263_v29  ;;  %v2277_v59 = vsub.f32 %v2211_v62, %v2263_v29  ;;  %v4206_v58 = vsub.f32 %v2214_v51, %v2263_v29  ;;  %v4211_v40 = vsub.f32 %v2217_v12, %v2263_v29 }
 0x542   :  { %v2288_v52 = vmul.f32 %v4181_v2, %v4181_v2  ;;  %v2289_v53 = vmul.f32 %v4183_v21, %v4183_v21  ;;  %v2290_v43 = vmul.f32 %v4185_v34, %v4185_v34  ;;  %v2291_v56 = vmul.f32 %v4187_v15, %v4187_v15 }
 0x543   :  { %v2292_v22 = vmul.f32 %v4189_v45, %v4189_v45  ;;  %v2293_v44 = vmul.f32 %v2277_v59, %v2277_v59  ;;  %v2294_v37 = vmul.f32 %v4206_v58, %v4206_v58  ;;  %v2295_v25 = vmul.f32 %v4211_v40, %v4211_v40 }
 0x544   :  { %v2317_v48 = vsel %vm105_vm2, %v2288_v52, 0.0  ;;  %v2318_v49 = vsel %vm105_vm2, %v2289_v53, 0.0  ;;  %v2320_v47 = vsel %vm105_vm2, %v2290_v43, 0.0  ;;  %v2322_v39 = vsel %vm105_vm2, %v2291_v56, 0.0 }
 0x545   :  { %v2319_v38 = vadd.f32 %v2318_v49, %v2317_v48  ;;  %v2324_v35 = vsel %vm105_vm2, %v2292_v22, 0.0  ;;  %v2326_v41 = vsel %vm105_vm2, %v2293_v44, 0.0  ;;  %v2328_v57 = vsel %vm105_vm2, %v2294_v37, 0.0 }
 0x546   :  { %v2330_v11 = vsel %vm105_vm2, %v2295_v25, 0.0 }
 0x547   :  { %v2321_v3 = vadd.f32 %v2320_v47, %v2319_v38  ;;  %v2496_v33 = vpop.f32.mrf.mxu2 }
 0x548   :  { %v2497_v27 = vadd.f32 %v4204_v31, %v2496_v33 }
 0x549   :  { %v2323_v13 = vadd.f32 %v2322_v39, %v2321_v3 }
 0x54a   :  { %2544 = vxpose.xlu0.b32.start [1/16] (narrow) %v2497_v27, 16 }
 0x54b   :  { %v2325_v0 = vadd.f32 %v2324_v35, %v2323_v13 }
 0x54d   :  { %v2327_v55 = vadd.f32 %v2326_v41, %v2325_v0 }
 0x54f   :  { %v2329_v8 = vadd.f32 %v2328_v57, %v2327_v55  ;;  %v2499_v63 = vpop.f32.mrf.mxu2 }
 0x550   :  { %v2500_v50 = vadd.f32 %v4204_v31, %v2499_v63 }
 0x551   :  { %v2331_v6 = vadd.f32 %v2330_v11, %v2329_v8 }
 0x552   :  { %2545 = vxpose.xlu0.b32.cont [2/16] (narrow) %v2500_v50, 16 }
 0x553   :  { %v2332_v36 = vrot.slane %v2331_v6, 4 }
 0x555   :  { %v2333_v5 = vadd.f32 %v2332_v36, %v2331_v6 }
 0x557   :  { %v2334_v1 = vrot.slane %v2333_v5, 2  ;;  %v2502_v62 = vpop.f32.mrf.mxu2 }
 0x558   :  { %v2503_v17 = vadd.f32 %v4204_v31, %v2502_v62 }
 0x559   :  { %v2335_v4 = vadd.f32 %v2334_v1, %v2333_v5 }
 0x55a   :  { %2546 = vxpose.xlu0.b32.cont [3/16] (narrow) %v2503_v17, 16 }
 0x55b   :  { %v2336_v60 = vrot.slane %v2335_v4, 1 }
 0x55d   :  { %v2337_v14 = vadd.f32 %v2336_v60, %v2335_v4 }
 0x55f   :  { %v2339_v54 = vmul.f32 %v2337_v14, %v3442_v28  ;;  %v2505_v18 = vpop.f32.mrf.mxu2 }
 0x560   :  { %v2506_v42 = vadd.f32 %v4204_v31, %v2505_v18 }
 0x561   :  { %v2341_v51 = vadd.f32 1e-05, %v2339_v54 }
 0x562   :  { %2547 = vxpose.xlu0.b32.cont [4/16] (narrow) %v2506_v42, 16 }
 0x563   :  { %2688 = vrsqrt.f32 %v2341_v51  ;;  %vm2358_vm8 = vweird.f32 %v2341_v51 }
 0x567   :  { %v2508_v10 = vpop.f32.mrf.mxu2 }
 0x568   :  { %v2509_v26 = vadd.f32 %v4204_v31, %v2508_v10 }
 0x569   :  { %v2689_v9 = vpop.eup %2688 }
 0x56a   :  { %v2353_v24 = vmul.f32 %v2689_v9, %v2341_v51  ;;  %2548 = vxpose.xlu0.b32.cont [5/16] (narrow) %v2509_v26, 16  ;;  %vm2359_vm6 = vweird.f32 %v2689_v9 }
 0x56b   :  { %vm2360_vm9 = vmor %vm2358_vm8, %vm2359_vm6 }
 0x56c   :  { %v2354_v12 = vmul.f32 %v2689_v9, %v2353_v24 }
 0x56e   :  { %v2355_v19 = vmul.f32 0.5, %v2354_v12 }
 0x56f   :  { %v2511_v16 = vpop.f32.mrf.mxu2 }
 0x570   :  { %v2356_v20 = vsub.f32 1.5, %v2355_v19  ;;  %v2512_v46 = vadd.f32 %v4204_v31, %v2511_v16 }
 0x572   :  { %v2357_v28 = vmul.f32 %v2689_v9, %v2356_v20  ;;  %2549 = vxpose.xlu0.b32.cont [6/16] (narrow) %v2512_v46, 16 }
 0x574   :  { %v2361_v7 = vsel %vm2360_vm9, %v2689_v9, %v2357_v28 }
 0x575   :  { %v2370_v23 = vmul.f32 %v2361_v7, %v4181_v2  ;;  %v2375_v32 = vmul.f32 %v2361_v7, %v2277_v59  ;;  %v2371_v56 = vmul.f32 %v2361_v7, %v4183_v21  ;;  %v2376_v48 = vmul.f32 %v2361_v7, %v4206_v58 }
 0x576   :  { %v2372_v47 = vmul.f32 %v2361_v7, %v4185_v34  ;;  %v2377_v3 = vmul.f32 %v2361_v7, %v4211_v40  ;;  %v2373_v39 = vmul.f32 %v2361_v7, %v4187_v15  ;;  %v2374_v13 = vmul.f32 %v2361_v7, %v4189_v45 }
 0x577   :  { %v2514_v30 = vpop.f32.mrf.mxu2  ;;  %vm2386_vm11 = vcmp.ge.f32.partialorder %v2370_v23, 0.0  ;;  %v2402_v61 = vmul.f32 0.01, %v2370_v23  ;;  %vm2391_vm5 = vcmp.ge.f32.partialorder %v2375_v32, 0.0  ;;  %v2407_v29 = vmul.f32 0.01, %v2375_v32 }
 0x578   :  { %v2515_v52 = vadd.f32 %v4204_v31, %v2514_v30  ;;  %v2403_v2 = vmul.f32 0.01, %v2371_v56  ;;  %vm2387_vm10 = vcmp.ge.f32.partialorder %v2371_v56, 0.0  ;;  %v2408_v59 = vmul.f32 0.01, %v2376_v48 }
 0x579   :  { %v2418_v53 = vsel %vm2386_vm11, %v2370_v23, %v2402_v61  ;;  %v2423_v43 = vsel %vm2391_vm5, %v2375_v32, %v2407_v29  ;;  %vm2392_vm12 = vcmp.ge.f32.partialorder %v2376_v48, 0.0  ;;  %v2404_v58 = vmul.f32 0.01, %v2372_v47 }
 0x57a   :  { %2550 = vxpose.xlu0.b32.cont [7/16] (narrow) %v2515_v52, 16  ;;  %2640 = vmatmul.msk.f32.gmra.mxu2 %vm105_vm2, %v2418_v53  ;;  %v2419_v22 = vsel %vm2387_vm10, %v2371_v56, %v2403_v2  ;;  %v2424_v21 = vsel %vm2392_vm12, %v2376_v48, %v2408_v59  ;;  %vm2388_vm13 = vcmp.ge.f32.partialorder %v2372_v47, 0.0  ;;  %v2409_v33 = vmul.f32 0.01, %v2377_v3 }
 0x57b   :  { %2645 = vmatmul.msk.f32.vlgmr.msra.gmra.mxu3 %vm105_vm2, %v2423_v43  ;;  %vm2393_vm14 = vcmp.ge.f32.partialorder %v2377_v3, 0.0  ;;  %v2420_v44 = vsel %vm2388_vm13, %v2372_v47, %v2404_v58  ;;  %v2405_v34 = vmul.f32 0.01, %v2373_v39  ;;  %vm2389_vm15 = vcmp.ge.f32.partialorder %v2373_v39, 0.0 }
 0x57c   :  { %v2425_v27 = vsel %vm2393_vm14, %v2377_v3, %v2409_v33  ;;  %v2406_v37 = vmul.f32 0.01, %v2374_v13  ;;  %vm2390_vm0 = vcmp.ge.f32.partialorder %v2374_v13, 0.0 }
 0x57d   :  { %v2421_v40 = vsel %vm2389_vm15, %v2373_v39, %v2405_v34 }
 0x57e   :  { %v2422_v35 = vsel %vm2390_vm0, %v2374_v13, %v2406_v37 }
 0x57f   :  { %v2517_v49 = vpop.f32.mrf.mxu2 }
 0x580   :  { %v2518_v38 = vadd.f32 %v4204_v31, %v2517_v49 }
 0x582   :  { %2551 = vxpose.xlu0.b32.cont [8/16] (narrow) %v2518_v38, 16  ;;  %2641 = vmatmul.msk.f32.gmra.mxu2 %vm105_vm2, %v2419_v22 }
 0x583   :  { %2646 = vmatmul.msk.f32.gmra.mxu3 %vm105_vm2, %v2424_v21 }
 0x58a   :  { %2642 = vmatmul.msk.f32.gmra.mxu2 %vm105_vm2, %v2420_v44 }
 0x58b   :  { %2647 = vmatmul.msk.f32.gmra.mxu3 %vm105_vm2, %v2425_v27 }
 0x592   :  { %2643 = vmatmul.msk.f32.gmra.mxu2 %vm105_vm2, %v2421_v40 }
 0x59a   :  { %2644 = vmatmul.msk.f32.gmra.mxu2 %vm105_vm2, %v2422_v35 }
 0x5fd   :  { %v2520_v0 = vpop.f32.mrf.mxu2 }
 0x5fe   :  { %v2521_v15 = vadd.f32 %v4204_v31, %v2520_v0  ;;  %v2535_v50 = vpop.f32.mrf.mxu3 }
 0x5ff   :  { %v2536_v6 = vadd.f32 %v4204_v31, %v2535_v50 }
 0x600   :  { %2552 = vxpose.xlu0.b32.cont [9/16] (narrow) %v2521_v15, 16 }
 0x605   :  { %v2523_v25 = vpop.f32.mrf.mxu2 }
 0x606   :  { %v2524_v41 = vadd.f32 %v4204_v31, %v2523_v25  ;;  %v2538_v36 = vpop.f32.mrf.mxu3 }
 0x607   :  { %v2539_v5 = vadd.f32 %v4204_v31, %v2538_v36 }
 0x608   :  { %2553 = vxpose.xlu0.b32.cont [10/16] (narrow) %v2524_v41, 16 }
 0x60d   :  { %v2526_v55 = vpop.f32.mrf.mxu2 }
 0x60e   :  { %v2527_v57 = vadd.f32 %v4204_v31, %v2526_v55  ;;  %v2541_v1 = vpop.f32.mrf.mxu3 }
 0x60f   :  { %v2542_v62 = vadd.f32 %v4204_v31, %v2541_v1 }
 0x610   :  { %2554 = vxpose.xlu0.b32.cont [11/16] (narrow) %v2527_v57, 16 }
 0x615   :  { %v2529_v45 = vpop.f32.mrf.mxu2 }
 0x616   :  { %v2530_v8 = vadd.f32 %v4204_v31, %v2529_v45 }
 0x618   :  { %2555 = vxpose.xlu0.b32.cont [12/16] (narrow) %v2530_v8, 16 }
 0x61d   :  { %v2532_v63 = vpop.f32.mrf.mxu2 }
 0x61e   :  { %v2533_v11 = vadd.f32 %v4204_v31, %v2532_v63 }
 0x620   :  { %2556 = vxpose.xlu0.b32.cont [13/16] (narrow) %v2533_v11, 16 }
 0x628   :  { %2557 = vxpose.xlu0.b32.cont [14/16] (narrow) %v2536_v6, 16 }
 0x630   :  { %2558 = vxpose.xlu0.b32.cont [15/16] (narrow) %v2539_v5, 16 }
 0x638   :  { %2559 = vxpose.xlu0.b32.end [16/16] (narrow) %v2542_v62, 16 }
 0x664   :  { %v2560_v17 = vpop.trf.xlu0 }
 0x665   :  { %2576 = vst [vmem:[#allocation4] sm:$0xff] %v2560_v17 }
 0x66c   :  { %v2561_v4 = vpop.trf.xlu0 }
 0x66d   :  { %2577 = vst [vmem:[#allocation4 + $0x8] sm:$0xff] %v2561_v4 }
 0x66e   :  { %2590 = dma.vmem_to_hbm [thread:$0]  %s2583_s18, 256, %s2585_s17, [#allocation5], %s2731_s19, %s2731_s19, %s2717_s0  }
 0x66f   :  { %2714 = dma.done.wait [#allocation5], 256  }
 0x670   :  { %2715 = vsyncadd [#allocation5], 4294967040 }
 0x671   :  { %2595 = vsyncpa [#allocation5], 1 }

</bundles_post_ra>
